<compile_context>
chip_gen: v7x
topology: tpu7x:2x2x1
jax: 0.10.0
libtpu: 0.0.40
codegen_flags: <defaults>
</compile_context>

<pallas_src>
import functools

import jax
import jax.numpy as jnp
from jax.experimental import pallas as pl
from jax.experimental.pallas import tpu as pltpu


# Above the default scoped VMEM limit on v5e/v6e/v7x, below v7x physical (64 MiB).
_VMEM_LIMIT = 48 * 1024 * 1024


# ------------------------------ tiling helpers -------------------------------

def _round_up(x, m):
    return (x + m - 1) // m * m


def _pick_tile(dim, pref, aligns):
    """Largest tile <= pref that divides dim, preferring coarser alignments
    (256-multiples first for full MXU occupancy on v6e/v7x).  Falls back to the
    full dim, which is always legal under the (8,128) block rule."""
    if dim <= pref:
        return dim
    for align in aligns:
        t = (pref // align) * align
        while t >= align:
            if dim % t == 0:
                return t
            t -= align
    return dim


def _plan_rows(M, pref=512):
    """Return (padded_M, row_tile): pad M up to a 256 multiple rather than
    accept a degenerate (tiny) row tile that collapses MXU occupancy."""
    if M <= pref:
        return M, M
    tm = _pick_tile(M, pref, (256, 128, 16, 8))
    if tm >= 128:
        return M, tm
    Mp = _round_up(M, 256)
    return Mp, _pick_tile(Mp, pref, (256, 128))


# ------------------------------- Pallas kernels -------------------------------

def _dense_kernel(x_ref, w_ref, b_ref, o_ref, acc_ref, *, activation):
    """Tiled matmul with K-reduction grid axis: o = act(x @ w + b)."""
    @pl.when(pl.program_id(2) == 0)
    def _init():
        acc_ref[...] = jnp.zeros_like(acc_ref)

    acc_ref[...] += jnp.dot(x_ref[...], w_ref[...],
                            preferred_element_type=jnp.float32)

    @pl.when(pl.program_id(2) == pl.num_programs(2) - 1)
    def _finalize():
        y = acc_ref[...] + b_ref[...]          # (1, tn) broadcasts over rows
        if activation == "gelu":
            # TODO(synk): PyTorch BERT uses erf-gelu; tanh approximation used
            # here (EUP-friendly, guaranteed Mosaic lowering).
            y = jax.nn.gelu(y, approximate=True)
        elif activation == "tanh":
            y = jnp.tanh(y)
        o_ref[...] = y.astype(o_ref.dtype)


def _dense_ln_kernel(x_ref, w_ref, b_ref, r_ref, g_ref, beta_ref, o_ref,
                     acc_ref, *, eps):
    """Tiled matmul (full-width N) with fused residual-add + LayerNorm finalize:
    o = LayerNorm(x @ w + b + residual)."""
    @pl.when(pl.program_id(1) == 0)
    def _init():
        acc_ref[...] = jnp.zeros_like(acc_ref)

    acc_ref[...] += jnp.dot(x_ref[...], w_ref[...],
                            preferred_element_type=jnp.float32)

    @pl.when(pl.program_id(1) == pl.num_programs(1) - 1)
    def _finalize():
        s = acc_ref[...] + b_ref[...] + r_ref[...].astype(jnp.float32)
        mu = jnp.mean(s, axis=-1, keepdims=True)
        d = s - mu
        var = jnp.mean(d * d, axis=-1, keepdims=True)
        o_ref[...] = (d * jax.lax.rsqrt(var + eps) * g_ref[...]
                      + beta_ref[...]).astype(o_ref.dtype)


def _ln_kernel(x_ref, g_ref, b_ref, o_ref):
    """LayerNorm over the last axis (embedding LN only)."""
    s = x_ref[...].astype(jnp.float32)
    mu = jnp.mean(s, axis=-1, keepdims=True)
    d = s - mu
    var = jnp.mean(d * d, axis=-1, keepdims=True)
    o_ref[...] = (d * jax.lax.rsqrt(var + 1e-12) * g_ref[...]
                  + b_ref[...]).astype(o_ref.dtype)


def _mha_slab_kernel(q_ref, k_ref, v_ref, bias_ref, o_ref, *,
                     heads, head_dim, scale):
    """Multi-head attention on one (batch, head-group, q-tile) step.

    q_ref: (1, tq, W), k_ref/v_ref: (1, S, W) — all three are lane-dense slices
    of the SAME packed (B, S, 3H) QKV array (the BlockSpecs offset into 3H, so
    nothing was re-materialized in HBM).  Per-head slices are read straight
    from the refs, the 1/sqrt(Dh) scale is folded into q, and each head's
    output is stored directly into its o_ref slice (no concatenate)."""
    bias = bias_ref[0]                              # (1, S) f32 additive bias
    for h in range(heads):                          # statically unrolled
        lo, hi = h * head_dim, (h + 1) * head_dim
        qh = q_ref[0, :, lo:hi] * scale             # (tq, Dh) bf16, pre-scaled
        kh = k_ref[0, :, lo:hi]                     # (S, Dh)
        vh = v_ref[0, :, lo:hi]                     # (S, Dh)
        s = jax.lax.dot_general(qh, kh, (((1,), (1,)), ((), ())),
                                preferred_element_type=jnp.float32)
        s = s + bias                                # (tq, S) f32
        m = jnp.max(s, axis=-1, keepdims=True)
        p = jnp.exp(s - m)
        p = p * pl.reciprocal(jnp.sum(p, axis=-1, keepdims=True), approx=True)
        o_ref[0, :, lo:hi] = jnp.dot(
            p.astype(vh.dtype), vh,
            preferred_element_type=jnp.float32).astype(o_ref.dtype)


def _mha_small_kernel(qkv_ref, bias_ref, o_ref, *, heads, head_dim, hidden,
                      scale):
    """Fallback MHA for hidden sizes not divisible by 128: one batch element per
    grid step, the whole packed (S, 3H) slab is in VMEM and q/k/v per-head
    slices are taken directly from the ref."""
    bias = bias_ref[0]                              # (1, S)
    for h in range(heads):
        lo = h * head_dim
        qh = qkv_ref[0, :, lo:lo + head_dim] * scale
        kh = qkv_ref[0, :, hidden + lo:hidden + lo + head_dim]
        vh = qkv_ref[0, :, 2 * hidden + lo:2 * hidden + lo + head_dim]
        s = jax.lax.dot_general(qh, kh, (((1,), (1,)), ((), ())),
                                preferred_element_type=jnp.float32) + bias
        m = jnp.max(s, axis=-1, keepdims=True)
        p = jnp.exp(s - m)
        p = p * pl.reciprocal(jnp.sum(p, axis=-1, keepdims=True), approx=True)
        o_ref[0, :, lo:lo + head_dim] = jnp.dot(
            p.astype(vh.dtype), vh,
            preferred_element_type=jnp.float32).astype(o_ref.dtype)


def _pooler_head_kernel(x_ref, pw_ref, pb_ref, cw_ref, cb_ref,
                        g_ref, beta_ref, mean_ref, var_ref, o_ref):
    """Fused: pooler(dense+tanh) -> dropout(eval identity) -> Linear
    -> BatchNorm1d(eval, running stats) -> softmax."""
    pooled = jnp.tanh(jnp.dot(x_ref[...], pw_ref[...],
                              preferred_element_type=jnp.float32) + pb_ref[...])
    logits = jnp.dot(pooled.astype(cw_ref.dtype), cw_ref[...],
                     preferred_element_type=jnp.float32) + cb_ref[...]
    logits = (logits - mean_ref[...]) * jax.lax.rsqrt(var_ref[...] + 1e-5)
    logits = logits * g_ref[...] + beta_ref[...]
    m = jnp.max(logits, axis=-1, keepdims=True)
    e = jnp.exp(logits - m)
    o_ref[...] = e * pl.reciprocal(jnp.sum(e, axis=-1, keepdims=True),
                                   approx=False)


# ------------------------------ kernel wrappers -------------------------------

def dense(x, w, b, activation="none", out_dtype=None):
    """o = act(x @ w + b), tiled (M, N, K) matmul with f32 VMEM accumulator."""
    M, K = x.shape
    _, N = w.shape
    out_dtype = out_dtype or x.dtype
    Mp, tm = _plan_rows(M)
    if Mp != M:
        x = jnp.pad(x, ((0, Mp - M), (0, 0)))
    tn = _pick_tile(N, 768, (256, 128))
    tk = _pick_tile(K, 1024, (256, 128))
    grid = (Mp // tm, N // tn, K // tk)
    kernel = functools.partial(_dense_kernel, activation=activation)
    bytes_accessed = ((Mp * K + K * N) * x.dtype.itemsize
                      + Mp * N * jnp.dtype(out_dtype).itemsize)
    out = pl.pallas_call(
        kernel,
        out_shape=jax.ShapeDtypeStruct((Mp, N), out_dtype),
        grid_spec=pltpu.PrefetchScalarGridSpec(
            num_scalar_prefetch=0,
            grid=grid,
            in_specs=[
                pl.BlockSpec((tm, tk), lambda i, j, k: (i, k)),
                pl.BlockSpec((tk, tn), lambda i, j, k: (k, j)),
                pl.BlockSpec((1, tn), lambda i, j, k: (0, j)),
            ],
            out_specs=pl.BlockSpec((tm, tn), lambda i, j, k: (i, j)),
            scratch_shapes=[pltpu.VMEM((tm, tn), jnp.float32)]),
        compiler_params=pltpu.CompilerParams(
            dimension_semantics=("parallel", "parallel", "arbitrary"),
            vmem_limit_bytes=_VMEM_LIMIT),
        cost_estimate=pl.CostEstimate(
            flops=2 * Mp * N * K,
            transcendentals=Mp * N if activation != "none" else 0,
            bytes_accessed=int(bytes_accessed)),
    )(x, w, b.reshape(1, N).astype(jnp.float32))
    return out if Mp == M else out[:M]


def dense_ln(x, w, b, residual, gamma, beta, out_dtype=None, eps=1e-12):
    """o = LayerNorm(x @ w + b + residual): full-width-N tiled matmul with the
    residual-add + LayerNorm fused into the reduction finalize (no extra HBM
    round trip for the standalone LN pass)."""
    M, K = x.shape
    _, N = w.shape
    out_dtype = out_dtype or x.dtype
    Mp, tm = _plan_rows(M)
    if Mp != M:
        x = jnp.pad(x, ((0, Mp - M), (0, 0)))
        residual = jnp.pad(residual, ((0, Mp - M), (0, 0)))
    tk = _pick_tile(K, 1024, (256, 128))
    grid = (Mp // tm, K // tk)
    kernel = functools.partial(_dense_ln_kernel, eps=eps)
    bytes_accessed = ((Mp * K + K * N + Mp * N) * x.dtype.itemsize
                      + Mp * N * jnp.dtype(out_dtype).itemsize)
    out = pl.pallas_call(
        kernel,
        out_shape=jax.ShapeDtypeStruct((Mp, N), out_dtype),
        grid_spec=pltpu.PrefetchScalarGridSpec(
            num_scalar_prefetch=0,
            grid=grid,
            in_specs=[
                pl.BlockSpec((tm, tk), lambda i, k: (i, k)),
                pl.BlockSpec((tk, N), lambda i, k: (k, 0)),
                pl.BlockSpec((1, N), lambda i, k: (0, 0)),
                pl.BlockSpec((tm, N), lambda i, k: (i, 0)),   # residual
                pl.BlockSpec((1, N), lambda i, k: (0, 0)),    # gamma
                pl.BlockSpec((1, N), lambda i, k: (0, 0)),    # beta
            ],
            out_specs=pl.BlockSpec((tm, N), lambda i, k: (i, 0)),
            scratch_shapes=[pltpu.VMEM((tm, N), jnp.float32)]),
        compiler_params=pltpu.CompilerParams(
            dimension_semantics=("parallel", "arbitrary"),
            vmem_limit_bytes=_VMEM_LIMIT),
        cost_estimate=pl.CostEstimate(
            flops=2 * Mp * N * K,
            transcendentals=0,
            bytes_accessed=int(bytes_accessed)),
    )(x, w, b.reshape(1, N).astype(jnp.float32),
      residual, gamma.reshape(1, N).astype(jnp.float32),
      beta.reshape(1, N).astype(jnp.float32))
    return out if Mp == M else out[:M]


def layer_norm(x, gamma, beta):
    """Standalone LayerNorm (embedding LN only)."""
    R, H = x.shape
    tr = _pick_tile(R, 512, (256, 128, 16, 8))
    row_spec = pl.BlockSpec((tr, H), lambda i: (i, 0))
    vec_spec = pl.BlockSpec((1, H), lambda i: (0, 0))
    return pl.pallas_call(
        _ln_kernel,
        out_shape=jax.ShapeDtypeStruct((R, H), x.dtype),
        grid=(R // tr,),
        in_specs=[row_spec, vec_spec, vec_spec],
        out_specs=row_spec,
        compiler_params=pltpu.CompilerParams(
            dimension_semantics=("parallel",),
            vmem_limit_bytes=_VMEM_LIMIT),
    )(x, gamma.reshape(1, H).astype(jnp.float32),
      beta.reshape(1, H).astype(jnp.float32))


def attention(qkv, bias, *, n_heads):
    """Multi-head self attention over the packed QKV projection.

    qkv:  (B, S, 3H) bf16 — q | k | v concatenated on the last axis.
    bias: (B, 1, S) f32 additive mask bias."""
    B, S, H3 = qkv.shape
    H = H3 // 3
    Dh = H // n_heads
    scale = 1.0 / (Dh ** 0.5)

    if H % 128 == 0:
        # Lane-dense head-group slabs, sliced straight out of the packed QKV
        # array by BlockSpec offsets into the 3H axis; prefer narrow groups
        # (W=128/256) to bound the live f32 score set per grid step.
        W = H
        for cand in (128, 256, 384, 512, H):
            if H % cand == 0 and cand % Dh == 0 and cand % 128 == 0:
                W = cand
                break
        G = H // W                       # head-groups per batch element
        Hg = W // Dh                     # heads handled per grid step
        tq = _pick_tile(S, 256, (128, 16, 8))
        kernel = functools.partial(_mha_slab_kernel, heads=Hg, head_dim=Dh,
                                   scale=scale)
        # Grid ordered so K/V blocks are reused across the innermost q-tile axis.
        q_spec = pl.BlockSpec((1, tq, W), lambda b, g, qi: (b, qi, g))
        k_spec = pl.BlockSpec((1, S, W), lambda b, g, qi: (b, 0, G + g))
        v_spec = pl.BlockSpec((1, S, W), lambda b, g, qi: (b, 0, 2 * G + g))
        bias_spec = pl.BlockSpec((1, 1, S), lambda b, g, qi: (b, 0, 0))
        o_spec = pl.BlockSpec((1, tq, W), lambda b, g, qi: (b, qi, g))
        bytes_accessed = 4 * B * S * H * qkv.dtype.itemsize + B * S * 4
        return pl.pallas_call(
            kernel,
            out_shape=jax.ShapeDtypeStruct((B, S, H), qkv.dtype),
            grid=(B, G, S // tq),
            in_specs=[q_spec, k_spec, v_spec, bias_spec],
            out_specs=o_spec,
            compiler_params=pltpu.CompilerParams(
                dimension_semantics=("parallel", "parallel", "parallel"),
                vmem_limit_bytes=_VMEM_LIMIT),
            cost_estimate=pl.CostEstimate(
                flops=4 * B * n_heads * S * S * Dh,
                transcendentals=B * n_heads * S * S,
                bytes_accessed=int(bytes_accessed)),
        )(qkv, qkv, qkv, bias)

    # Small-hidden fallback (test configs): whole (S, 3H) slab per batch element.
    kernel = functools.partial(_mha_small_kernel, heads=n_heads, head_dim=Dh,
                               hidden=H, scale=scale)
    return pl.pallas_call(
        kernel,
        out_shape=jax.ShapeDtypeStruct((B, S, H), qkv.dtype),
        grid=(B,),
        in_specs=[pl.BlockSpec((1, S, H3), lambda b: (b, 0, 0)),
                  pl.BlockSpec((1, 1, S), lambda b: (b, 0, 0))],
        out_specs=pl.BlockSpec((1, S, H), lambda b: (b, 0, 0)),
        compiler_params=pltpu.CompilerParams(
            dimension_semantics=("parallel",),
            vmem_limit_bytes=_VMEM_LIMIT),
    )(qkv, bias)


def pooler_and_head(cls_tok, pool_w, pool_b, cls_w, cls_b,
                    bn_g, bn_b, bn_mean, bn_var):
    B, H = cls_tok.shape
    C = cls_w.shape[1]
    vec = lambda a: a.reshape(1, -1).astype(jnp.float32)

    def full(shape):
        return pl.BlockSpec(shape, lambda: (0,) * len(shape))

    return pl.pallas_call(
        _pooler_head_kernel,
        out_shape=jax.ShapeDtypeStruct((B, C), jnp.float32),
        in_specs=[full((B, H)), full((H, H)), full((1, H)),
                  full((H, C)), full((1, C)), full((1, C)), full((1, C)),
                  full((1, C)), full((1, C))],
        out_specs=full((B, C)),
        compiler_params=pltpu.CompilerParams(vmem_limit_bytes=_VMEM_LIMIT),
    )(cls_tok, pool_w, vec(pool_b), cls_w, vec(cls_b),
      vec(bn_g), vec(bn_b), vec(bn_mean), vec(bn_var))


# ------------------------------ model definition ------------------------------

def init_params(key, *, vocab_size, type_vocab_size, max_pos, hidden, n_heads,
                intermediate, n_layers, num_classes):
    scale = 0.02

    def nrm(k, shape):
        return (scale * jax.random.normal(k, shape, jnp.float32)).astype(jnp.bfloat16)

    keys = jax.random.split(key, 8 + 8 * n_layers)
    it = iter(keys)
    params = {
        "word_emb": nrm(next(it), (vocab_size, hidden)),
        "pos_emb": nrm(next(it), (max_pos, hidden)),
        "type_emb": nrm(next(it), (type_vocab_size, hidden)),
        "emb_ln_g": jnp.ones((hidden,), jnp.float32),
        "emb_ln_b": jnp.zeros((hidden,), jnp.float32),
        "pool_w": nrm(next(it), (hidden, hidden)),
        "pool_b": jnp.zeros((hidden,), jnp.float32),
        "cls_w": nrm(next(it), (hidden, num_classes)),
        "cls_b": jnp.zeros((num_classes,), jnp.float32),
        "bn_gamma": jnp.ones((num_classes,), jnp.float32),
        "bn_beta": jnp.zeros((num_classes,), jnp.float32),
        "bn_mean": jnp.zeros((num_classes,), jnp.float32),
        "bn_var": jnp.ones((num_classes,), jnp.float32),
        "layers": [],
    }
    for _ in range(n_layers):
        layer = {
            # fused Q|K|V projection
            "w_qkv": nrm(next(it), (hidden, 3 * hidden)),
            "b_qkv": jnp.zeros((3 * hidden,), jnp.float32),
            "wo": nrm(next(it), (hidden, hidden)),
            "bo": jnp.zeros((hidden,), jnp.float32),
            "ln1_g": jnp.ones((hidden,), jnp.float32),
            "ln1_b": jnp.zeros((hidden,), jnp.float32),
            "w1": nrm(next(it), (hidden, intermediate)),
            "b1": jnp.zeros((intermediate,), jnp.float32),
            "w2": nrm(next(it), (intermediate, hidden)),
            "b2": jnp.zeros((hidden,), jnp.float32),
            "ln2_g": jnp.ones((hidden,), jnp.float32),
            "ln2_b": jnp.zeros((hidden,), jnp.float32),
        }
        params["layers"].append(layer)
    return params


def bert_for_classification_forward(params, input_ids, attention_mask,
                                    token_type_ids, *, n_heads):
    B, S = input_ids.shape
    H = params["word_emb"].shape[1]

    # --- embeddings (gathers are plain-JAX glue) ---
    emb = (params["word_emb"][input_ids]
           + params["pos_emb"][jnp.arange(S)][None, :, :]
           + params["type_emb"][token_type_ids])                 # (B, S, H) bf16
    x2d = layer_norm(emb.reshape(B * S, H),
                     params["emb_ln_g"], params["emb_ln_b"])     # (B*S, H) bf16

    # additive attention bias, computed once for all layers/heads
    bias = ((1.0 - attention_mask.astype(jnp.float32)) * (-1e9)).reshape(B, 1, S)

    # --- transformer encoder layers ---
    for layer in params["layers"]:
        # fused QKV projection; output stays packed (no q/k/v HBM copies)
        qkv = dense(x2d, layer["w_qkv"], layer["b_qkv"])         # (B*S, 3H) bf16
        ctx = attention(qkv.reshape(B, S, 3 * H), bias,
                        n_heads=n_heads)                         # (B, S, H) bf16
        # attention-output projection with fused residual-add + LayerNorm
        x2d = dense_ln(ctx.reshape(B * S, H), layer["wo"], layer["bo"],
                       residual=x2d, gamma=layer["ln1_g"], beta=layer["ln1_b"])
        # FFN: up-projection + gelu, then down-projection with fused Add&LN
        ffn = dense(x2d, layer["w1"], layer["b1"], activation="gelu")
        x2d = dense_ln(ffn, layer["w2"], layer["b2"],
                       residual=x2d, gamma=layer["ln2_g"], beta=layer["ln2_b"])

    # --- pooler + dropout(eval) + Linear + BatchNorm1d(eval) + softmax, fused ---
    cls_tok = x2d.reshape(B, S, H)[:, 0, :]
    probs = pooler_and_head(
        cls_tok, params["pool_w"], params["pool_b"],
        params["cls_w"], params["cls_b"],
        params["bn_gamma"], params["bn_beta"],
        params["bn_mean"], params["bn_var"])
    return probs


# ------------------------------------ main ------------------------------------

if __name__ == "__main__":
    # Small config consistent with the module's forward (hidden=768 -> 32 here).
    BATCH, SEQ = 2, 8
    HIDDEN, N_HEADS, INTERMEDIATE, N_LAYERS = 32, 4, 64, 2
    VOCAB, TYPE_VOCAB, MAX_POS = 100, 2, 16
    NUM_CLASSES = 2

    key = jax.random.PRNGKey(0)
    k_param, k_ids = jax.random.split(key)

    params = init_params(
        k_param, vocab_size=VOCAB, type_vocab_size=TYPE_VOCAB, max_pos=MAX_POS,
        hidden=HIDDEN, n_heads=N_HEADS, intermediate=INTERMEDIATE,
        n_layers=N_LAYERS, num_classes=NUM_CLASSES)

    input_ids = jax.random.randint(k_ids, (BATCH, SEQ), 0, VOCAB, dtype=jnp.int32)
    attention_mask = jnp.ones((BATCH, SEQ), dtype=jnp.int32).at[1, 6:].set(0)
    token_type_ids = jnp.zeros((BATCH, SEQ), dtype=jnp.int32).at[:, 4:].set(1)

    fwd = jax.jit(functools.partial(bert_for_classification_forward,
                                    n_heads=N_HEADS))
    logits = fwd(params, input_ids, attention_mask, token_type_ids)
    logits = jax.block_until_ready(logits)

    assert logits.shape == (BATCH, NUM_CLASSES)
    assert bool(jnp.all(jnp.isfinite(logits)))
    # softmax rows sum to 1
    assert bool(jnp.allclose(jnp.sum(logits, axis=-1), 1.0, atol=1e-5))
    print("KERNEL_OK")
</pallas_src>

<mosaic_0001>
module attributes {stable_mosaic.version = 11 : i64} {
  func.func @_ln_kernel(%arg0: i32, %arg1: memref<16x32xbf16, #tpu.memory_space<vmem>>, %arg2: memref<1x32xf32, #tpu.memory_space<vmem>>, %arg3: memref<1x32xf32, #tpu.memory_space<vmem>>, %arg4: memref<16x32xbf16, #tpu.memory_space<vmem>>) attributes {dimension_semantics = [#tpu.dimension_semantics<parallel>], iteration_bounds = array<i64: 1>, scalar_prefetch = 0 : i64, scratch_operands = 0 : i64, tpu.core_type = #tpu.core_type<tc>, window_params = [{transform_indices = @transform_0, window_bounds = array<i64: 16, 32>}, {pipeline_mode = #tpu.pipeline_mode<synchronous>, transform_indices = @transform_1, window_bounds = array<i64: 1, 32>}, {pipeline_mode = #tpu.pipeline_mode<synchronous>, transform_indices = @transform_2, window_bounds = array<i64: 1, 32>}, {transform_indices = @transform_3, window_bounds = array<i64: 16, 32>}]} {
    %c0 = arith.constant 0 : index
    %c0_0 = arith.constant 0 : index
    %0 = vector.load %arg1[%c0, %c0_0] : memref<16x32xbf16, #tpu.memory_space<vmem>>, vector<16x32xbf16>
    %1 = arith.extf %0 : vector<16x32xbf16> to vector<16x32xf32>
    %cst = arith.constant dense<0.000000e+00> : vector<16xf32>
    %2 = vector.multi_reduction <add>, %1, %cst [1] : vector<16x32xf32> to vector<16xf32>
    %3 = vector.shape_cast %2 : vector<16xf32> to vector<16x1xf32>
    %cst_1 = arith.constant 3.200000e+01 : f32
    %4 = vector.broadcast %cst_1 : f32 to vector<16x1xf32>
    %5 = arith.divf %3, %4 : vector<16x1xf32>
    %6 = vector.broadcast %5 : vector<16x1xf32> to vector<16x32xf32>
    %7 = arith.subf %1, %6 : vector<16x32xf32>
    %8 = arith.mulf %7, %7 : vector<16x32xf32>
    %cst_2 = arith.constant dense<0.000000e+00> : vector<16xf32>
    %9 = vector.multi_reduction <add>, %8, %cst_2 [1] : vector<16x32xf32> to vector<16xf32>
    %10 = vector.shape_cast %9 : vector<16xf32> to vector<16x1xf32>
    %cst_3 = arith.constant 3.200000e+01 : f32
    %11 = vector.broadcast %cst_3 : f32 to vector<16x1xf32>
    %12 = arith.divf %10, %11 : vector<16x1xf32>
    %cst_4 = arith.constant 9.99999996E-13 : f32
    %13 = vector.broadcast %cst_4 : f32 to vector<16x1xf32>
    %14 = arith.addf %12, %13 : vector<16x1xf32>
    %15 = math.rsqrt %14 : vector<16x1xf32>
    %16 = vector.broadcast %15 : vector<16x1xf32> to vector<16x32xf32>
    %17 = arith.mulf %7, %16 : vector<16x32xf32>
    %c0_5 = arith.constant 0 : index
    %c0_6 = arith.constant 0 : index
    %18 = vector.load %arg2[%c0_5, %c0_6] : memref<1x32xf32, #tpu.memory_space<vmem>>, vector<1x32xf32>
    %19 = vector.broadcast %18 : vector<1x32xf32> to vector<16x32xf32>
    %20 = arith.mulf %17, %19 : vector<16x32xf32>
    %c0_7 = arith.constant 0 : index
    %c0_8 = arith.constant 0 : index
    %21 = vector.load %arg3[%c0_7, %c0_8] : memref<1x32xf32, #tpu.memory_space<vmem>>, vector<1x32xf32>
    %22 = vector.broadcast %21 : vector<1x32xf32> to vector<16x32xf32>
    %23 = arith.addf %20, %22 : vector<16x32xf32>
    %24 = arith.truncf %23 : vector<16x32xf32> to vector<16x32xbf16>
    %c0_9 = arith.constant 0 : index
    %c0_10 = arith.constant 0 : index
    %25 = vector.load %arg4[%c0_9, %c0_10] : memref<16x32xbf16, #tpu.memory_space<vmem>>, vector<16x32xbf16>
    tpu.vector_store %arg4[%c0_9, %c0_10], %24 {strides = array<i32>} : memref<16x32xbf16, #tpu.memory_space<vmem>>, vector<16x32xbf16>,
    return
  }
  func.func @transform_0(%arg0: i32) -> (i32, i32) {
    %c0_i32 = arith.constant 0 : i32
    %c0_i32_0 = arith.constant 0 : i32
    return %arg0, %c0_i32 : i32, i32
  }
  func.func @transform_1(%arg0: i32) -> (i32, i32) {
    %c0_i32 = arith.constant 0 : i32
    %c0_i32_0 = arith.constant 0 : i32
    %c0_i32_1 = arith.constant 0 : i32
    return %c0_i32, %c0_i32_0 : i32, i32
  }
  func.func @transform_2(%arg0: i32) -> (i32, i32) {
    %c0_i32 = arith.constant 0 : i32
    %c0_i32_0 = arith.constant 0 : i32
    %c0_i32_1 = arith.constant 0 : i32
    return %c0_i32, %c0_i32_0 : i32, i32
  }
  func.func @transform_3(%arg0: i32) -> (i32, i32) {
    %c0_i32 = arith.constant 0 : i32
    %c0_i32_0 = arith.constant 0 : i32
    return %arg0, %c0_i32 : i32, i32
  }
}

module attributes {stable_mosaic.version = 11 : i64} {
  func.func @_mha_small_kernel(%arg0: i32, %arg1: memref<1x8x96xbf16, #tpu.memory_space<vmem>>, %arg2: memref<1x1x8xf32, #tpu.memory_space<vmem>>, %arg3: memref<1x8x32xbf16, #tpu.memory_space<vmem>>) attributes {dimension_semantics = [#tpu.dimension_semantics<parallel>], iteration_bounds = array<i64: 2>, scalar_prefetch = 0 : i64, scratch_operands = 0 : i64, tpu.core_type = #tpu.core_type<tc>, window_params = [{transform_indices = @transform_0, window_bounds = array<i64: 1, 8, 96>}, {transform_indices = @transform_1, window_bounds = array<i64: 1, 1, 8>}, {transform_indices = @transform_2, window_bounds = array<i64: 1, 8, 32>}]} {
    %c0 = arith.constant 0 : index
    %c0_0 = arith.constant 0 : index
    %c0_1 = arith.constant 0 : index
    %0 = vector.load %arg2[%c0, %c0_0, %c0_1] : memref<1x1x8xf32, #tpu.memory_space<vmem>>, vector<1x1x8xf32>
    %1 = vector.shape_cast %0 : vector<1x1x8xf32> to vector<1x8xf32>
    %c0_2 = arith.constant 0 : index
    %c0_3 = arith.constant 0 : index
    %c0_4 = arith.constant 0 : index
    %2 = vector.load %arg1[%c0_2, %c0_3, %c0_4] : memref<1x8x96xbf16, #tpu.memory_space<vmem>>, vector<1x8x8xbf16>
    %3 = vector.shape_cast %2 : vector<1x8x8xbf16> to vector<8x8xbf16>
    %cst = arith.constant 3.535160e-01 : bf16
    %4 = vector.broadcast %cst : bf16 to vector<8x8xbf16>
    %5 = arith.mulf %3, %4 : vector<8x8xbf16>
    %c0_5 = arith.constant 0 : index
    %c0_6 = arith.constant 0 : index
    %c32 = arith.constant 32 : index
    %6 = vector.load %arg1[%c0_5, %c0_6, %c32] : memref<1x8x96xbf16, #tpu.memory_space<vmem>>, vector<1x8x8xbf16>
    %7 = vector.shape_cast %6 : vector<1x8x8xbf16> to vector<8x8xbf16>
    %c0_7 = arith.constant 0 : index
    %c0_8 = arith.constant 0 : index
    %c64 = arith.constant 64 : index
    %8 = vector.load %arg1[%c0_7, %c0_8, %c64] : memref<1x8x96xbf16, #tpu.memory_space<vmem>>, vector<1x8x8xbf16>
    %9 = vector.shape_cast %8 : vector<1x8x8xbf16> to vector<8x8xbf16>
    %cst_9 = arith.constant dense<0.000000e+00> : vector<8x8xf32>
    %10 = tpu.matmul %5, %7, %cst_9 {dimension_numbers = #tpu.dot_dimension_numbers<[1], [1], [0], [0], [0, 0, 1, 0], [], []>} : vector<8x8xbf16>, vector<8x8xbf16>, vector<8x8xf32> -> vector<8x8xf32>
    %11 = vector.broadcast %1 : vector<1x8xf32> to vector<8x8xf32>
    %12 = arith.addf %10, %11 : vector<8x8xf32>
    %cst_10 = arith.constant dense<0xFF800000> : vector<8xf32>
    %13 = vector.multi_reduction <maximumf>, %12, %cst_10 [1] : vector<8x8xf32> to vector<8xf32>
    %14 = vector.shape_cast %13 : vector<8xf32> to vector<8x1xf32>
    %15 = vector.broadcast %14 : vector<8x1xf32> to vector<8x8xf32>
    %16 = arith.subf %12, %15 : vector<8x8xf32>
    %17 = math.exp %16 : vector<8x8xf32>
    %cst_11 = arith.constant dense<0.000000e+00> : vector<8xf32>
    %18 = vector.multi_reduction <add>, %17, %cst_11 [1] : vector<8x8xf32> to vector<8xf32>
    %19 = vector.shape_cast %18 : vector<8xf32> to vector<8x1xf32>
    %20 = tpu.reciprocal %19 {approx = true} : vector<8x1xf32> -> vector<8x1xf32>
    %21 = vector.broadcast %20 : vector<8x1xf32> to vector<8x8xf32>
    %22 = arith.mulf %17, %21 : vector<8x8xf32>
    %23 = arith.truncf %22 : vector<8x8xf32> to vector<8x8xbf16>
    %cst_12 = arith.constant dense<0.000000e+00> : vector<8x8xf32>
    %24 = tpu.matmul %23, %9, %cst_12 {dimension_numbers = #tpu.dot_dimension_numbers<[1], [0], [0], [1], [0, 0, 1, 1], [], []>} : vector<8x8xbf16>, vector<8x8xbf16>, vector<8x8xf32> -> vector<8x8xf32>
    %25 = arith.truncf %24 : vector<8x8xf32> to vector<8x8xbf16>
    %c0_13 = arith.constant 0 : index
    %c0_14 = arith.constant 0 : index
    %c0_15 = arith.constant 0 : index
    %26 = vector.load %arg3[%c0_13, %c0_14, %c0_15] : memref<1x8x32xbf16, #tpu.memory_space<vmem>>, vector<1x8x8xbf16>
    %27 = vector.shape_cast %26 : vector<1x8x8xbf16> to vector<8x8xbf16>
    %28 = vector.shape_cast %25 : vector<8x8xbf16> to vector<1x8x8xbf16>
    tpu.vector_store %arg3[%c0_13, %c0_14, %c0_15], %28 {strides = array<i32>} : memref<1x8x32xbf16, #tpu.memory_space<vmem>>, vector<1x8x8xbf16>,
    %c0_16 = arith.constant 0 : index
    %c0_17 = arith.constant 0 : index
    %c8 = arith.constant 8 : index
    %29 = vector.load %arg1[%c0_16, %c0_17, %c8] : memref<1x8x96xbf16, #tpu.memory_space<vmem>>, vector<1x8x8xbf16>
    %30 = vector.shape_cast %29 : vector<1x8x8xbf16> to vector<8x8xbf16>
    %cst_18 = arith.constant 3.535160e-01 : bf16
    %31 = vector.broadcast %cst_18 : bf16 to vector<8x8xbf16>
    %32 = arith.mulf %30, %31 : vector<8x8xbf16>
    %c0_19 = arith.constant 0 : index
    %c0_20 = arith.constant 0 : index
    %c40 = arith.constant 40 : index
    %33 = vector.load %arg1[%c0_19, %c0_20, %c40] : memref<1x8x96xbf16, #tpu.memory_space<vmem>>, vector<1x8x8xbf16>
    %34 = vector.shape_cast %33 : vector<1x8x8xbf16> to vector<8x8xbf16>
    %c0_21 = arith.constant 0 : index
    %c0_22 = arith.constant 0 : index
    %c72 = arith.constant 72 : index
    %35 = vector.load %arg1[%c0_21, %c0_22, %c72] : memref<1x8x96xbf16, #tpu.memory_space<vmem>>, vector<1x8x8xbf16>
    %36 = vector.shape_cast %35 : vector<1x8x8xbf16> to vector<8x8xbf16>
    %cst_23 = arith.constant dense<0.000000e+00> : vector<8x8xf32>
    %37 = tpu.matmul %32, %34, %cst_23 {dimension_numbers = #tpu.dot_dimension_numbers<[1], [1], [0], [0], [0, 0, 1, 0], [], []>} : vector<8x8xbf16>, vector<8x8xbf16>, vector<8x8xf32> -> vector<8x8xf32>
    %38 = vector.broadcast %1 : vector<1x8xf32> to vector<8x8xf32>
    %39 = arith.addf %37, %38 : vector<8x8xf32>
    %cst_24 = arith.constant dense<0xFF800000> : vector<8xf32>
    %40 = vector.multi_reduction <maximumf>, %39, %cst_24 [1] : vector<8x8xf32> to vector<8xf32>
    %41 = vector.shape_cast %40 : vector<8xf32> to vector<8x1xf32>
    %42 = vector.broadcast %41 : vector<8x1xf32> to vector<8x8xf32>
    %43 = arith.subf %39, %42 : vector<8x8xf32>
    %44 = math.exp %43 : vector<8x8xf32>
    %cst_25 = arith.constant dense<0.000000e+00> : vector<8xf32>
    %45 = vector.multi_reduction <add>, %44, %cst_25 [1] : vector<8x8xf32> to vector<8xf32>
    %46 = vector.shape_cast %45 : vector<8xf32> to vector<8x1xf32>
    %47 = tpu.reciprocal %46 {approx = true} : vector<8x1xf32> -> vector<8x1xf32>
    %48 = vector.broadcast %47 : vector<8x1xf32> to vector<8x8xf32>
    %49 = arith.mulf %44, %48 : vector<8x8xf32>
    %50 = arith.truncf %49 : vector<8x8xf32> to vector<8x8xbf16>
    %cst_26 = arith.constant dense<0.000000e+00> : vector<8x8xf32>
    %51 = tpu.matmul %50, %36, %cst_26 {dimension_numbers = #tpu.dot_dimension_numbers<[1], [0], [0], [1], [0, 0, 1, 1], [], []>} : vector<8x8xbf16>, vector<8x8xbf16>, vector<8x8xf32> -> vector<8x8xf32>
    %52 = arith.truncf %51 : vector<8x8xf32> to vector<8x8xbf16>
    %c0_27 = arith.constant 0 : index
    %c0_28 = arith.constant 0 : index
    %c8_29 = arith.constant 8 : index
    %53 = vector.load %arg3[%c0_27, %c0_28, %c8_29] : memref<1x8x32xbf16, #tpu.memory_space<vmem>>, vector<1x8x8xbf16>
    %54 = vector.shape_cast %53 : vector<1x8x8xbf16> to vector<8x8xbf16>
    %55 = vector.shape_cast %52 : vector<8x8xbf16> to vector<1x8x8xbf16>
    tpu.vector_store %arg3[%c0_27, %c0_28, %c8_29], %55 {strides = array<i32>} : memref<1x8x32xbf16, #tpu.memory_space<vmem>>, vector<1x8x8xbf16>,
    %c0_30 = arith.constant 0 : index
    %c0_31 = arith.constant 0 : index
    %c16 = arith.constant 16 : index
    %56 = vector.load %arg1[%c0_30, %c0_31, %c16] : memref<1x8x96xbf16, #tpu.memory_space<vmem>>, vector<1x8x8xbf16>
    %57 = vector.shape_cast %56 : vector<1x8x8xbf16> to vector<8x8xbf16>
    %cst_32 = arith.constant 3.535160e-01 : bf16
    %58 = vector.broadcast %cst_32 : bf16 to vector<8x8xbf16>
    %59 = arith.mulf %57, %58 : vector<8x8xbf16>
    %c0_33 = arith.constant 0 : index
    %c0_34 = arith.constant 0 : index
    %c48 = arith.constant 48 : index
    %60 = vector.load %arg1[%c0_33, %c0_34, %c48] : memref<1x8x96xbf16, #tpu.memory_space<vmem>>, vector<1x8x8xbf16>
    %61 = vector.shape_cast %60 : vector<1x8x8xbf16> to vector<8x8xbf16>
    %c0_35 = arith.constant 0 : index
    %c0_36 = arith.constant 0 : index
    %c80 = arith.constant 80 : index
    %62 = vector.load %arg1[%c0_35, %c0_36, %c80] : memref<1x8x96xbf16, #tpu.memory_space<vmem>>, vector<1x8x8xbf16>
    %63 = vector.shape_cast %62 : vector<1x8x8xbf16> to vector<8x8xbf16>
    %cst_37 = arith.constant dense<0.000000e+00> : vector<8x8xf32>
    %64 = tpu.matmul %59, %61, %cst_37 {dimension_numbers = #tpu.dot_dimension_numbers<[1], [1], [0], [0], [0, 0, 1, 0], [], []>} : vector<8x8xbf16>, vector<8x8xbf16>, vector<8x8xf32> -> vector<8x8xf32>
    %65 = vector.broadcast %1 : vector<1x8xf32> to vector<8x8xf32>
    %66 = arith.addf %64, %65 : vector<8x8xf32>
    %cst_38 = arith.constant dense<0xFF800000> : vector<8xf32>
    %67 = vector.multi_reduction <maximumf>, %66, %cst_38 [1] : vector<8x8xf32> to vector<8xf32>
    %68 = vector.shape_cast %67 : vector<8xf32> to vector<8x1xf32>
    %69 = vector.broadcast %68 : vector<8x1xf32> to vector<8x8xf32>
    %70 = arith.subf %66, %69 : vector<8x8xf32>
    %71 = math.exp %70 : vector<8x8xf32>
    %cst_39 = arith.constant dense<0.000000e+00> : vector<8xf32>
    %72 = vector.multi_reduction <add>, %71, %cst_39 [1] : vector<8x8xf32> to vector<8xf32>
    %73 = vector.shape_cast %72 : vector<8xf32> to vector<8x1xf32>
    %74 = tpu.reciprocal %73 {approx = true} : vector<8x1xf32> -> vector<8x1xf32>
    %75 = vector.broadcast %74 : vector<8x1xf32> to vector<8x8xf32>
    %76 = arith.mulf %71, %75 : vector<8x8xf32>
    %77 = arith.truncf %76 : vector<8x8xf32> to vector<8x8xbf16>
    %cst_40 = arith.constant dense<0.000000e+00> : vector<8x8xf32>
    %78 = tpu.matmul %77, %63, %cst_40 {dimension_numbers = #tpu.dot_dimension_numbers<[1], [0], [0], [1], [0, 0, 1, 1], [], []>} : vector<8x8xbf16>, vector<8x8xbf16>, vector<8x8xf32> -> vector<8x8xf32>
    %79 = arith.truncf %78 : vector<8x8xf32> to vector<8x8xbf16>
    %c0_41 = arith.constant 0 : index
    %c0_42 = arith.constant 0 : index
    %c16_43 = arith.constant 16 : index
    %80 = vector.load %arg3[%c0_41, %c0_42, %c16_43] : memref<1x8x32xbf16, #tpu.memory_space<vmem>>, vector<1x8x8xbf16>
    %81 = vector.shape_cast %80 : vector<1x8x8xbf16> to vector<8x8xbf16>
    %82 = vector.shape_cast %79 : vector<8x8xbf16> to vector<1x8x8xbf16>
    tpu.vector_store %arg3[%c0_41, %c0_42, %c16_43], %82 {strides = array<i32>} : memref<1x8x32xbf16, #tpu.memory_space<vmem>>, vector<1x8x8xbf16>,
    %c0_44 = arith.constant 0 : index
    %c0_45 = arith.constant 0 : index
    %c24 = arith.constant 24 : index
    %83 = vector.load %arg1[%c0_44, %c0_45, %c24] : memref<1x8x96xbf16, #tpu.memory_space<vmem>>, vector<1x8x8xbf16>
    %84 = vector.shape_cast %83 : vector<1x8x8xbf16> to vector<8x8xbf16>
    %cst_46 = arith.constant 3.535160e-01 : bf16
    %85 = vector.broadcast %cst_46 : bf16 to vector<8x8xbf16>
    %86 = arith.mulf %84, %85 : vector<8x8xbf16>
    %c0_47 = arith.constant 0 : index
    %c0_48 = arith.constant 0 : index
    %c56 = arith.constant 56 : index
    %87 = vector.load %arg1[%c0_47, %c0_48, %c56] : memref<1x8x96xbf16, #tpu.memory_space<vmem>>, vector<1x8x8xbf16>
    %88 = vector.shape_cast %87 : vector<1x8x8xbf16> to vector<8x8xbf16>
    %c0_49 = arith.constant 0 : index
    %c0_50 = arith.constant 0 : index
    %c88 = arith.constant 88 : index
    %89 = vector.load %arg1[%c0_49, %c0_50, %c88] : memref<1x8x96xbf16, #tpu.memory_space<vmem>>, vector<1x8x8xbf16>
    %90 = vector.shape_cast %89 : vector<1x8x8xbf16> to vector<8x8xbf16>
    %cst_51 = arith.constant dense<0.000000e+00> : vector<8x8xf32>
    %91 = tpu.matmul %86, %88, %cst_51 {dimension_numbers = #tpu.dot_dimension_numbers<[1], [1], [0], [0], [0, 0, 1, 0], [], []>} : vector<8x8xbf16>, vector<8x8xbf16>, vector<8x8xf32> -> vector<8x8xf32>
    %92 = vector.broadcast %1 : vector<1x8xf32> to vector<8x8xf32>
    %93 = arith.addf %91, %92 : vector<8x8xf32>
    %cst_52 = arith.constant dense<0xFF800000> : vector<8xf32>
    %94 = vector.multi_reduction <maximumf>, %93, %cst_52 [1] : vector<8x8xf32> to vector<8xf32>
    %95 = vector.shape_cast %94 : vector<8xf32> to vector<8x1xf32>
    %96 = vector.broadcast %95 : vector<8x1xf32> to vector<8x8xf32>
    %97 = arith.subf %93, %96 : vector<8x8xf32>
    %98 = math.exp %97 : vector<8x8xf32>
    %cst_53 = arith.constant dense<0.000000e+00> : vector<8xf32>
    %99 = vector.multi_reduction <add>, %98, %cst_53 [1] : vector<8x8xf32> to vector<8xf32>
    %100 = vector.shape_cast %99 : vector<8xf32> to vector<8x1xf32>
    %101 = tpu.reciprocal %100 {approx = true} : vector<8x1xf32> -> vector<8x1xf32>
    %102 = vector.broadcast %101 : vector<8x1xf32> to vector<8x8xf32>
    %103 = arith.mulf %98, %102 : vector<8x8xf32>
    %104 = arith.truncf %103 : vector<8x8xf32> to vector<8x8xbf16>
    %cst_54 = arith.constant dense<0.000000e+00> : vector<8x8xf32>
    %105 = tpu.matmul %104, %90, %cst_54 {dimension_numbers = #tpu.dot_dimension_numbers<[1], [0], [0], [1], [0, 0, 1, 1], [], []>} : vector<8x8xbf16>, vector<8x8xbf16>, vector<8x8xf32> -> vector<8x8xf32>
    %106 = arith.truncf %105 : vector<8x8xf32> to vector<8x8xbf16>
    %c0_55 = arith.constant 0 : index
    %c0_56 = arith.constant 0 : index
    %c24_57 = arith.constant 24 : index
    %107 = vector.load %arg3[%c0_55, %c0_56, %c24_57] : memref<1x8x32xbf16, #tpu.memory_space<vmem>>, vector<1x8x8xbf16>
    %108 = vector.shape_cast %107 : vector<1x8x8xbf16> to vector<8x8xbf16>
    %109 = vector.shape_cast %106 : vector<8x8xbf16> to vector<1x8x8xbf16>
    tpu.vector_store %arg3[%c0_55, %c0_56, %c24_57], %109 {strides = array<i32>} : memref<1x8x32xbf16, #tpu.memory_space<vmem>>, vector<1x8x8xbf16>,
    return
  }
  func.func @transform_0(%arg0: i32) -> (i32, i32, i32) {
    %c0_i32 = arith.constant 0 : i32
    %c0_i32_0 = arith.constant 0 : i32
    %c0_i32_1 = arith.constant 0 : i32
    return %arg0, %c0_i32, %c0_i32_0 : i32, i32, i32
  }
  func.func @transform_1(%arg0: i32) -> (i32, i32, i32) {
    %c0_i32 = arith.constant 0 : i32
    %c0_i32_0 = arith.constant 0 : i32
    %c0_i32_1 = arith.constant 0 : i32
    return %arg0, %c0_i32, %c0_i32_0 : i32, i32, i32
  }
  func.func @transform_2(%arg0: i32) -> (i32, i32, i32) {
    %c0_i32 = arith.constant 0 : i32
    %c0_i32_0 = arith.constant 0 : i32
    %c0_i32_1 = arith.constant 0 : i32
    return %arg0, %c0_i32, %c0_i32_0 : i32, i32, i32
  }
}

module attributes {stable_mosaic.version = 11 : i64} {
  func.func @_dense_ln_kernel(%arg0: i32, %arg1: i32, %arg2: memref<16x32xbf16, #tpu.memory_space<vmem>>, %arg3: memref<32x32xbf16, #tpu.memory_space<vmem>>, %arg4: memref<1x32xf32, #tpu.memory_space<vmem>>, %arg5: memref<16x32xbf16, #tpu.memory_space<vmem>>, %arg6: memref<1x32xf32, #tpu.memory_space<vmem>>, %arg7: memref<1x32xf32, #tpu.memory_space<vmem>>, %arg8: memref<16x32xbf16, #tpu.memory_space<vmem>>, %arg9: memref<16x32xf32, #tpu.memory_space<vmem>>) attributes {dimension_semantics = [#tpu.dimension_semantics<parallel>, #tpu.dimension_semantics<arbitrary>], iteration_bounds = array<i64: 1, 1>, scalar_prefetch = 0 : i64, scratch_operands = 1 : i64, tpu.core_type = #tpu.core_type<tc>, window_params = [{transform_indices = @transform_0, window_bounds = array<i64: 16, 32>}, {transform_indices = @transform_1, window_bounds = array<i64: 32, 32>}, {pipeline_mode = #tpu.pipeline_mode<synchronous>, transform_indices = @transform_2, window_bounds = array<i64: 1, 32>}, {transform_indices = @transform_3, window_bounds = array<i64: 16, 32>}, {pipeline_mode = #tpu.pipeline_mode<synchronous>, transform_indices = @transform_4, window_bounds = array<i64: 1, 32>}, {pipeline_mode = #tpu.pipeline_mode<synchronous>, transform_indices = @transform_5, window_bounds = array<i64: 1, 32>}, {transform_indices = @transform_6, window_bounds = array<i64: 16, 32>}]} {
    %c0_i32 = arith.constant 0 : i32
    %0 = arith.cmpi eq, %arg1, %c0_i32 : i32
    %1 = arith.extui %0 : i1 to i32
    %c0_i32_0 = arith.constant 0 : i32
    %2 = arith.cmpi ne, %1, %c0_i32_0 : i32
    scf.if %2 {
      %cst_10 = arith.constant 0.000000e+00 : f32
      %12 = vector.broadcast %cst_10 : f32 to vector<16x32xf32>
      %c0_11 = arith.constant 0 : index
      %c0_12 = arith.constant 0 : index
      %13 = vector.load %arg9[%c0_11, %c0_12] : memref<16x32xf32, #tpu.memory_space<vmem>>, vector<16x32xf32>
      tpu.vector_store %arg9[%c0_11, %c0_12], %12 {strides = array<i32>} : memref<16x32xf32, #tpu.memory_space<vmem>>, vector<16x32xf32>,
    } else {
    }
    %c0 = arith.constant 0 : index
    %c0_1 = arith.constant 0 : index
    %3 = vector.load %arg9[%c0, %c0_1] : memref<16x32xf32, #tpu.memory_space<vmem>>, vector<16x32xf32>
    %c0_2 = arith.constant 0 : index
    %c0_3 = arith.constant 0 : index
    %4 = vector.load %arg2[%c0_2, %c0_3] : memref<16x32xbf16, #tpu.memory_space<vmem>>, vector<16x32xbf16>
    %c0_4 = arith.constant 0 : index
    %c0_5 = arith.constant 0 : index
    %5 = vector.load %arg3[%c0_4, %c0_5] : memref<32x32xbf16, #tpu.memory_space<vmem>>, vector<32x32xbf16>
    %cst = arith.constant dense<0.000000e+00> : vector<16x32xf32>
    %6 = tpu.matmul %4, %5, %cst {dimension_numbers = #tpu.dot_dimension_numbers<[1], [0], [0], [1], [0, 0, 1, 1], [], []>} : vector<16x32xbf16>, vector<32x32xbf16>, vector<16x32xf32> -> vector<16x32xf32>
    %7 = arith.addf %3, %6 : vector<16x32xf32>
    %c0_6 = arith.constant 0 : index
    %c0_7 = arith.constant 0 : index
    %8 = vector.load %arg9[%c0_6, %c0_7] : memref<16x32xf32, #tpu.memory_space<vmem>>, vector<16x32xf32>
    tpu.vector_store %arg9[%c0_6, %c0_7], %7 {strides = array<i32>} : memref<16x32xf32, #tpu.memory_space<vmem>>, vector<16x32xf32>,
    %c0_i32_8 = arith.constant 0 : i32
    %9 = arith.cmpi eq, %arg1, %c0_i32_8 : i32
    %10 = arith.extui %9 : i1 to i32
    %c0_i32_9 = arith.constant 0 : i32
    %11 = arith.cmpi ne, %10, %c0_i32_9 : i32
    scf.if %11 {
      %c0_10 = arith.constant 0 : index
      %c0_11 = arith.constant 0 : index
      %12 = vector.load %arg9[%c0_10, %c0_11] : memref<16x32xf32, #tpu.memory_space<vmem>>, vector<16x32xf32>
      %c0_12 = arith.constant 0 : index
      %c0_13 = arith.constant 0 : index
      %13 = vector.load %arg4[%c0_12, %c0_13] : memref<1x32xf32, #tpu.memory_space<vmem>>, vector<1x32xf32>
      %14 = vector.broadcast %13 : vector<1x32xf32> to vector<16x32xf32>
      %15 = arith.addf %12, %14 : vector<16x32xf32>
      %c0_14 = arith.constant 0 : index
      %c0_15 = arith.constant 0 : index
      %16 = vector.load %arg5[%c0_14, %c0_15] : memref<16x32xbf16, #tpu.memory_space<vmem>>, vector<16x32xbf16>
      %17 = arith.extf %16 : vector<16x32xbf16> to vector<16x32xf32>
      %18 = arith.addf %15, %17 : vector<16x32xf32>
      %cst_16 = arith.constant dense<0.000000e+00> : vector<16xf32>
      %19 = vector.multi_reduction <add>, %18, %cst_16 [1] : vector<16x32xf32> to vector<16xf32>
      %20 = vector.shape_cast %19 : vector<16xf32> to vector<16x1xf32>
      %cst_17 = arith.constant 3.200000e+01 : f32
      %21 = vector.broadcast %cst_17 : f32 to vector<16x1xf32>
      %22 = arith.divf %20, %21 : vector<16x1xf32>
      %23 = vector.broadcast %22 : vector<16x1xf32> to vector<16x32xf32>
      %24 = arith.subf %18, %23 : vector<16x32xf32>
      %25 = arith.mulf %24, %24 : vector<16x32xf32>
      %cst_18 = arith.constant dense<0.000000e+00> : vector<16xf32>
      %26 = vector.multi_reduction <add>, %25, %cst_18 [1] : vector<16x32xf32> to vector<16xf32>
      %27 = vector.shape_cast %26 : vector<16xf32> to vector<16x1xf32>
      %cst_19 = arith.constant 3.200000e+01 : f32
      %28 = vector.broadcast %cst_19 : f32 to vector<16x1xf32>
      %29 = arith.divf %27, %28 : vector<16x1xf32>
      %cst_20 = arith.constant 9.99999996E-13 : f32
      %30 = vector.broadcast %cst_20 : f32 to vector<16x1xf32>
      %31 = arith.addf %29, %30 : vector<16x1xf32>
      %32 = math.rsqrt %31 : vector<16x1xf32>
      %33 = vector.broadcast %32 : vector<16x1xf32> to vector<16x32xf32>
      %34 = arith.mulf %24, %33 : vector<16x32xf32>
      %c0_21 = arith.constant 0 : index
      %c0_22 = arith.constant 0 : index
      %35 = vector.load %arg6[%c0_21, %c0_22] : memref<1x32xf32, #tpu.memory_space<vmem>>, vector<1x32xf32>
      %36 = vector.broadcast %35 : vector<1x32xf32> to vector<16x32xf32>
      %37 = arith.mulf %34, %36 : vector<16x32xf32>
      %c0_23 = arith.constant 0 : index
      %c0_24 = arith.constant 0 : index
      %38 = vector.load %arg7[%c0_23, %c0_24] : memref<1x32xf32, #tpu.memory_space<vmem>>, vector<1x32xf32>
      %39 = vector.broadcast %38 : vector<1x32xf32> to vector<16x32xf32>
      %40 = arith.addf %37, %39 : vector<16x32xf32>
      %41 = arith.truncf %40 : vector<16x32xf32> to vector<16x32xbf16>
      %c0_25 = arith.constant 0 : index
      %c0_26 = arith.constant 0 : index
      %42 = vector.load %arg8[%c0_25, %c0_26] : memref<16x32xbf16, #tpu.memory_space<vmem>>, vector<16x32xbf16>
      tpu.vector_store %arg8[%c0_25, %c0_26], %41 {strides = array<i32>} : memref<16x32xbf16, #tpu.memory_space<vmem>>, vector<16x32xbf16>,
    } else {
    }
    return
  }
  func.func @transform_0(%arg0: i32, %arg1: i32) -> (i32, i32) {
    %c0_i32 = arith.constant 0 : i32
    return %arg0, %arg1 : i32, i32
  }
  func.func @transform_1(%arg0: i32, %arg1: i32) -> (i32, i32) {
    %c0_i32 = arith.constant 0 : i32
    %c0_i32_0 = arith.constant 0 : i32
    return %arg1, %c0_i32 : i32, i32
  }
  func.func @transform_2(%arg0: i32, %arg1: i32) -> (i32, i32) {
    %c0_i32 = arith.constant 0 : i32
    %c0_i32_0 = arith.constant 0 : i32
    %c0_i32_1 = arith.constant 0 : i32
    return %c0_i32, %c0_i32_0 : i32, i32
  }
  func.func @transform_3(%arg0: i32, %arg1: i32) -> (i32, i32) {
    %c0_i32 = arith.constant 0 : i32
    %c0_i32_0 = arith.constant 0 : i32
    return %arg0, %c0_i32 : i32, i32
  }
  func.func @transform_4(%arg0: i32, %arg1: i32) -> (i32, i32) {
    %c0_i32 = arith.constant 0 : i32
    %c0_i32_0 = arith.constant 0 : i32
    %c0_i32_1 = arith.constant 0 : i32
    return %c0_i32, %c0_i32_0 : i32, i32
  }
  func.func @transform_5(%arg0: i32, %arg1: i32) -> (i32, i32) {
    %c0_i32 = arith.constant 0 : i32
    %c0_i32_0 = arith.constant 0 : i32
    %c0_i32_1 = arith.constant 0 : i32
    return %c0_i32, %c0_i32_0 : i32, i32
  }
  func.func @transform_6(%arg0: i32, %arg1: i32) -> (i32, i32) {
    %c0_i32 = arith.constant 0 : i32
    %c0_i32_0 = arith.constant 0 : i32
    return %arg0, %c0_i32 : i32, i32
  }
}

module attributes {stable_mosaic.version = 11 : i64} {
  func.func @_dense_kernel(%arg0: i32, %arg1: i32, %arg2: i32, %arg3: memref<16x32xbf16, #tpu.memory_space<vmem>>, %arg4: memref<32x96xbf16, #tpu.memory_space<vmem>>, %arg5: memref<1x96xf32, #tpu.memory_space<vmem>>, %arg6: memref<16x96xbf16, #tpu.memory_space<vmem>>, %arg7: memref<16x96xf32, #tpu.memory_space<vmem>>) attributes {dimension_semantics = [#tpu.dimension_semantics<parallel>, #tpu.dimension_semantics<parallel>, #tpu.dimension_semantics<arbitrary>], iteration_bounds = array<i64: 1, 1, 1>, scalar_prefetch = 0 : i64, scratch_operands = 1 : i64, tpu.core_type = #tpu.core_type<tc>, window_params = [{transform_indices = @transform_0, window_bounds = array<i64: 16, 32>}, {transform_indices = @transform_1, window_bounds = array<i64: 32, 96>}, {transform_indices = @transform_2, window_bounds = array<i64: 1, 96>}, {transform_indices = @transform_3, window_bounds = array<i64: 16, 96>}]} {
    %c0_i32 = arith.constant 0 : i32
    %0 = arith.cmpi eq, %arg2, %c0_i32 : i32
    %1 = arith.extui %0 : i1 to i32
    %c0_i32_0 = arith.constant 0 : i32
    %2 = arith.cmpi ne, %1, %c0_i32_0 : i32
    scf.if %2 {
      %cst_10 = arith.constant 0.000000e+00 : f32
      %12 = vector.broadcast %cst_10 : f32 to vector<16x96xf32>
      %c0_11 = arith.constant 0 : index
      %c0_12 = arith.constant 0 : index
      %13 = vector.load %arg7[%c0_11, %c0_12] : memref<16x96xf32, #tpu.memory_space<vmem>>, vector<16x96xf32>
      tpu.vector_store %arg7[%c0_11, %c0_12], %12 {strides = array<i32>} : memref<16x96xf32, #tpu.memory_space<vmem>>, vector<16x96xf32>,
    } else {
    }
    %c0 = arith.constant 0 : index
    %c0_1 = arith.constant 0 : index
    %3 = vector.load %arg7[%c0, %c0_1] : memref<16x96xf32, #tpu.memory_space<vmem>>, vector<16x96xf32>
    %c0_2 = arith.constant 0 : index
    %c0_3 = arith.constant 0 : index
    %4 = vector.load %arg3[%c0_2, %c0_3] : memref<16x32xbf16, #tpu.memory_space<vmem>>, vector<16x32xbf16>
    %c0_4 = arith.constant 0 : index
    %c0_5 = arith.constant 0 : index
    %5 = vector.load %arg4[%c0_4, %c0_5] : memref<32x96xbf16, #tpu.memory_space<vmem>>, vector<32x96xbf16>
    %cst = arith.constant dense<0.000000e+00> : vector<16x96xf32>
    %6 = tpu.matmul %4, %5, %cst {dimension_numbers = #tpu.dot_dimension_numbers<[1], [0], [0], [1], [0, 0, 1, 1], [], []>} : vector<16x32xbf16>, vector<32x96xbf16>, vector<16x96xf32> -> vector<16x96xf32>
    %7 = arith.addf %3, %6 : vector<16x96xf32>
    %c0_6 = arith.constant 0 : index
    %c0_7 = arith.constant 0 : index
    %8 = vector.load %arg7[%c0_6, %c0_7] : memref<16x96xf32, #tpu.memory_space<vmem>>, vector<16x96xf32>
    tpu.vector_store %arg7[%c0_6, %c0_7], %7 {strides = array<i32>} : memref<16x96xf32, #tpu.memory_space<vmem>>, vector<16x96xf32>,
    %c0_i32_8 = arith.constant 0 : i32
    %9 = arith.cmpi eq, %arg2, %c0_i32_8 : i32
    %10 = arith.extui %9 : i1 to i32
    %c0_i32_9 = arith.constant 0 : i32
    %11 = arith.cmpi ne, %10, %c0_i32_9 : i32
    scf.if %11 {
      %c0_10 = arith.constant 0 : index
      %c0_11 = arith.constant 0 : index
      %12 = vector.load %arg7[%c0_10, %c0_11] : memref<16x96xf32, #tpu.memory_space<vmem>>, vector<16x96xf32>
      %c0_12 = arith.constant 0 : index
      %c0_13 = arith.constant 0 : index
      %13 = vector.load %arg5[%c0_12, %c0_13] : memref<1x96xf32, #tpu.memory_space<vmem>>, vector<1x96xf32>
      %14 = vector.broadcast %13 : vector<1x96xf32> to vector<16x96xf32>
      %15 = arith.addf %12, %14 : vector<16x96xf32>
      %16 = arith.truncf %15 : vector<16x96xf32> to vector<16x96xbf16>
      %c0_14 = arith.constant 0 : index
      %c0_15 = arith.constant 0 : index
      %17 = vector.load %arg6[%c0_14, %c0_15] : memref<16x96xbf16, #tpu.memory_space<vmem>>, vector<16x96xbf16>
      tpu.vector_store %arg6[%c0_14, %c0_15], %16 {strides = array<i32>} : memref<16x96xbf16, #tpu.memory_space<vmem>>, vector<16x96xbf16>,
    } else {
    }
    return
  }
  func.func @transform_0(%arg0: i32, %arg1: i32, %arg2: i32) -> (i32, i32) {
    %c0_i32 = arith.constant 0 : i32
    return %arg0, %arg2 : i32, i32
  }
  func.func @transform_1(%arg0: i32, %arg1: i32, %arg2: i32) -> (i32, i32) {
    %c0_i32 = arith.constant 0 : i32
    return %arg2, %arg1 : i32, i32
  }
  func.func @transform_2(%arg0: i32, %arg1: i32, %arg2: i32) -> (i32, i32) {
    %c0_i32 = arith.constant 0 : i32
    %c0_i32_0 = arith.constant 0 : i32
    return %c0_i32, %arg1 : i32, i32
  }
  func.func @transform_3(%arg0: i32, %arg1: i32, %arg2: i32) -> (i32, i32) {
    %c0_i32 = arith.constant 0 : i32
    return %arg0, %arg1 : i32, i32
  }
}

module attributes {stable_mosaic.version = 11 : i64} {
  func.func @_dense_kernel(%arg0: i32, %arg1: i32, %arg2: i32, %arg3: memref<16x32xbf16, #tpu.memory_space<vmem>>, %arg4: memref<32x64xbf16, #tpu.memory_space<vmem>>, %arg5: memref<1x64xf32, #tpu.memory_space<vmem>>, %arg6: memref<16x64xbf16, #tpu.memory_space<vmem>>, %arg7: memref<16x64xf32, #tpu.memory_space<vmem>>) attributes {dimension_semantics = [#tpu.dimension_semantics<parallel>, #tpu.dimension_semantics<parallel>, #tpu.dimension_semantics<arbitrary>], iteration_bounds = array<i64: 1, 1, 1>, scalar_prefetch = 0 : i64, scratch_operands = 1 : i64, tpu.core_type = #tpu.core_type<tc>, window_params = [{transform_indices = @transform_0, window_bounds = array<i64: 16, 32>}, {transform_indices = @transform_1, window_bounds = array<i64: 32, 64>}, {transform_indices = @transform_2, window_bounds = array<i64: 1, 64>}, {transform_indices = @transform_3, window_bounds = array<i64: 16, 64>}]} {
    %c0_i32 = arith.constant 0 : i32
    %0 = arith.cmpi eq, %arg2, %c0_i32 : i32
    %1 = arith.extui %0 : i1 to i32
    %c0_i32_0 = arith.constant 0 : i32
    %2 = arith.cmpi ne, %1, %c0_i32_0 : i32
    scf.if %2 {
      %cst_10 = arith.constant 0.000000e+00 : f32
      %12 = vector.broadcast %cst_10 : f32 to vector<16x64xf32>
      %c0_11 = arith.constant 0 : index
      %c0_12 = arith.constant 0 : index
      %13 = vector.load %arg7[%c0_11, %c0_12] : memref<16x64xf32, #tpu.memory_space<vmem>>, vector<16x64xf32>
      tpu.vector_store %arg7[%c0_11, %c0_12], %12 {strides = array<i32>} : memref<16x64xf32, #tpu.memory_space<vmem>>, vector<16x64xf32>,
    } else {
    }
    %c0 = arith.constant 0 : index
    %c0_1 = arith.constant 0 : index
    %3 = vector.load %arg7[%c0, %c0_1] : memref<16x64xf32, #tpu.memory_space<vmem>>, vector<16x64xf32>
    %c0_2 = arith.constant 0 : index
    %c0_3 = arith.constant 0 : index
    %4 = vector.load %arg3[%c0_2, %c0_3] : memref<16x32xbf16, #tpu.memory_space<vmem>>, vector<16x32xbf16>
    %c0_4 = arith.constant 0 : index
    %c0_5 = arith.constant 0 : index
    %5 = vector.load %arg4[%c0_4, %c0_5] : memref<32x64xbf16, #tpu.memory_space<vmem>>, vector<32x64xbf16>
    %cst = arith.constant dense<0.000000e+00> : vector<16x64xf32>
    %6 = tpu.matmul %4, %5, %cst {dimension_numbers = #tpu.dot_dimension_numbers<[1], [0], [0], [1], [0, 0, 1, 1], [], []>} : vector<16x32xbf16>, vector<32x64xbf16>, vector<16x64xf32> -> vector<16x64xf32>
    %7 = arith.addf %3, %6 : vector<16x64xf32>
    %c0_6 = arith.constant 0 : index
    %c0_7 = arith.constant 0 : index
    %8 = vector.load %arg7[%c0_6, %c0_7] : memref<16x64xf32, #tpu.memory_space<vmem>>, vector<16x64xf32>
    tpu.vector_store %arg7[%c0_6, %c0_7], %7 {strides = array<i32>} : memref<16x64xf32, #tpu.memory_space<vmem>>, vector<16x64xf32>,
    %c0_i32_8 = arith.constant 0 : i32
    %9 = arith.cmpi eq, %arg2, %c0_i32_8 : i32
    %10 = arith.extui %9 : i1 to i32
    %c0_i32_9 = arith.constant 0 : i32
    %11 = arith.cmpi ne, %10, %c0_i32_9 : i32
    scf.if %11 {
      %c0_10 = arith.constant 0 : index
      %c0_11 = arith.constant 0 : index
      %12 = vector.load %arg7[%c0_10, %c0_11] : memref<16x64xf32, #tpu.memory_space<vmem>>, vector<16x64xf32>
      %c0_12 = arith.constant 0 : index
      %c0_13 = arith.constant 0 : index
      %13 = vector.load %arg5[%c0_12, %c0_13] : memref<1x64xf32, #tpu.memory_space<vmem>>, vector<1x64xf32>
      %14 = vector.broadcast %13 : vector<1x64xf32> to vector<16x64xf32>
      %15 = arith.addf %12, %14 : vector<16x64xf32>
      %16 = arith.mulf %15, %15 : vector<16x64xf32>
      %17 = arith.mulf %15, %16 : vector<16x64xf32>
      %cst_14 = arith.constant 4.471500e-02 : f32
      %18 = vector.broadcast %cst_14 : f32 to vector<16x64xf32>
      %19 = arith.mulf %18, %17 : vector<16x64xf32>
      %20 = arith.addf %15, %19 : vector<16x64xf32>
      %cst_15 = arith.constant 0.797884583 : f32
      %21 = vector.broadcast %cst_15 : f32 to vector<16x64xf32>
      %22 = arith.mulf %21, %20 : vector<16x64xf32>
      %23 = math.tanh %22 : vector<16x64xf32>
      %cst_16 = arith.constant 1.000000e+00 : f32
      %24 = vector.broadcast %cst_16 : f32 to vector<16x64xf32>
      %25 = arith.addf %24, %23 : vector<16x64xf32>
      %cst_17 = arith.constant 5.000000e-01 : f32
      %26 = vector.broadcast %cst_17 : f32 to vector<16x64xf32>
      %27 = arith.mulf %26, %25 : vector<16x64xf32>
      %28 = arith.mulf %15, %27 : vector<16x64xf32>
      %29 = arith.truncf %28 : vector<16x64xf32> to vector<16x64xbf16>
      %c0_18 = arith.constant 0 : index
      %c0_19 = arith.constant 0 : index
      %30 = vector.load %arg6[%c0_18, %c0_19] : memref<16x64xbf16, #tpu.memory_space<vmem>>, vector<16x64xbf16>
      tpu.vector_store %arg6[%c0_18, %c0_19], %29 {strides = array<i32>} : memref<16x64xbf16, #tpu.memory_space<vmem>>, vector<16x64xbf16>,
    } else {
    }
    return
  }
  func.func @transform_0(%arg0: i32, %arg1: i32, %arg2: i32) -> (i32, i32) {
    %c0_i32 = arith.constant 0 : i32
    return %arg0, %arg2 : i32, i32
  }
  func.func @transform_1(%arg0: i32, %arg1: i32, %arg2: i32) -> (i32, i32) {
    %c0_i32 = arith.constant 0 : i32
    return %arg2, %arg1 : i32, i32
  }
  func.func @transform_2(%arg0: i32, %arg1: i32, %arg2: i32) -> (i32, i32) {
    %c0_i32 = arith.constant 0 : i32
    %c0_i32_0 = arith.constant 0 : i32
    return %c0_i32, %arg1 : i32, i32
  }
  func.func @transform_3(%arg0: i32, %arg1: i32, %arg2: i32) -> (i32, i32) {
    %c0_i32 = arith.constant 0 : i32
    return %arg0, %arg1 : i32, i32
  }
}

module attributes {stable_mosaic.version = 11 : i64} {
  func.func @_dense_ln_kernel(%arg0: i32, %arg1: i32, %arg2: memref<16x64xbf16, #tpu.memory_space<vmem>>, %arg3: memref<64x32xbf16, #tpu.memory_space<vmem>>, %arg4: memref<1x32xf32, #tpu.memory_space<vmem>>, %arg5: memref<16x32xbf16, #tpu.memory_space<vmem>>, %arg6: memref<1x32xf32, #tpu.memory_space<vmem>>, %arg7: memref<1x32xf32, #tpu.memory_space<vmem>>, %arg8: memref<16x32xbf16, #tpu.memory_space<vmem>>, %arg9: memref<16x32xf32, #tpu.memory_space<vmem>>) attributes {dimension_semantics = [#tpu.dimension_semantics<parallel>, #tpu.dimension_semantics<arbitrary>], iteration_bounds = array<i64: 1, 1>, scalar_prefetch = 0 : i64, scratch_operands = 1 : i64, tpu.core_type = #tpu.core_type<tc>, window_params = [{transform_indices = @transform_0, window_bounds = array<i64: 16, 64>}, {transform_indices = @transform_1, window_bounds = array<i64: 64, 32>}, {pipeline_mode = #tpu.pipeline_mode<synchronous>, transform_indices = @transform_2, window_bounds = array<i64: 1, 32>}, {transform_indices = @transform_3, window_bounds = array<i64: 16, 32>}, {pipeline_mode = #tpu.pipeline_mode<synchronous>, transform_indices = @transform_4, window_bounds = array<i64: 1, 32>}, {pipeline_mode = #tpu.pipeline_mode<synchronous>, transform_indices = @transform_5, window_bounds = array<i64: 1, 32>}, {transform_indices = @transform_6, window_bounds = array<i64: 16, 32>}]} {
    %c0_i32 = arith.constant 0 : i32
    %0 = arith.cmpi eq, %arg1, %c0_i32 : i32
    %1 = arith.extui %0 : i1 to i32
    %c0_i32_0 = arith.constant 0 : i32
    %2 = arith.cmpi ne, %1, %c0_i32_0 : i32
    scf.if %2 {
      %cst_10 = arith.constant 0.000000e+00 : f32
      %12 = vector.broadcast %cst_10 : f32 to vector<16x32xf32>
      %c0_11 = arith.constant 0 : index
      %c0_12 = arith.constant 0 : index
      %13 = vector.load %arg9[%c0_11, %c0_12] : memref<16x32xf32, #tpu.memory_space<vmem>>, vector<16x32xf32>
      tpu.vector_store %arg9[%c0_11, %c0_12], %12 {strides = array<i32>} : memref<16x32xf32, #tpu.memory_space<vmem>>, vector<16x32xf32>,
    } else {
    }
    %c0 = arith.constant 0 : index
    %c0_1 = arith.constant 0 : index
    %3 = vector.load %arg9[%c0, %c0_1] : memref<16x32xf32, #tpu.memory_space<vmem>>, vector<16x32xf32>
    %c0_2 = arith.constant 0 : index
    %c0_3 = arith.constant 0 : index
    %4 = vector.load %arg2[%c0_2, %c0_3] : memref<16x64xbf16, #tpu.memory_space<vmem>>, vector<16x64xbf16>
    %c0_4 = arith.constant 0 : index
    %c0_5 = arith.constant 0 : index
    %5 = vector.load %arg3[%c0_4, %c0_5] : memref<64x32xbf16, #tpu.memory_space<vmem>>, vector<64x32xbf16>
    %cst = arith.constant dense<0.000000e+00> : vector<16x32xf32>
    %6 = tpu.matmul %4, %5, %cst {dimension_numbers = #tpu.dot_dimension_numbers<[1], [0], [0], [1], [0, 0, 1, 1], [], []>} : vector<16x64xbf16>, vector<64x32xbf16>, vector<16x32xf32> -> vector<16x32xf32>
    %7 = arith.addf %3, %6 : vector<16x32xf32>
    %c0_6 = arith.constant 0 : index
    %c0_7 = arith.constant 0 : index
    %8 = vector.load %arg9[%c0_6, %c0_7] : memref<16x32xf32, #tpu.memory_space<vmem>>, vector<16x32xf32>
    tpu.vector_store %arg9[%c0_6, %c0_7], %7 {strides = array<i32>} : memref<16x32xf32, #tpu.memory_space<vmem>>, vector<16x32xf32>,
    %c0_i32_8 = arith.constant 0 : i32
    %9 = arith.cmpi eq, %arg1, %c0_i32_8 : i32
    %10 = arith.extui %9 : i1 to i32
    %c0_i32_9 = arith.constant 0 : i32
    %11 = arith.cmpi ne, %10, %c0_i32_9 : i32
    scf.if %11 {
      %c0_10 = arith.constant 0 : index
      %c0_11 = arith.constant 0 : index
      %12 = vector.load %arg9[%c0_10, %c0_11] : memref<16x32xf32, #tpu.memory_space<vmem>>, vector<16x32xf32>
      %c0_12 = arith.constant 0 : index
      %c0_13 = arith.constant 0 : index
      %13 = vector.load %arg4[%c0_12, %c0_13] : memref<1x32xf32, #tpu.memory_space<vmem>>, vector<1x32xf32>
      %14 = vector.broadcast %13 : vector<1x32xf32> to vector<16x32xf32>
      %15 = arith.addf %12, %14 : vector<16x32xf32>
      %c0_14 = arith.constant 0 : index
      %c0_15 = arith.constant 0 : index
      %16 = vector.load %arg5[%c0_14, %c0_15] : memref<16x32xbf16, #tpu.memory_space<vmem>>, vector<16x32xbf16>
      %17 = arith.extf %16 : vector<16x32xbf16> to vector<16x32xf32>
      %18 = arith.addf %15, %17 : vector<16x32xf32>
      %cst_16 = arith.constant dense<0.000000e+00> : vector<16xf32>
      %19 = vector.multi_reduction <add>, %18, %cst_16 [1] : vector<16x32xf32> to vector<16xf32>
      %20 = vector.shape_cast %19 : vector<16xf32> to vector<16x1xf32>
      %cst_17 = arith.constant 3.200000e+01 : f32
      %21 = vector.broadcast %cst_17 : f32 to vector<16x1xf32>
      %22 = arith.divf %20, %21 : vector<16x1xf32>
      %23 = vector.broadcast %22 : vector<16x1xf32> to vector<16x32xf32>
      %24 = arith.subf %18, %23 : vector<16x32xf32>
      %25 = arith.mulf %24, %24 : vector<16x32xf32>
      %cst_18 = arith.constant dense<0.000000e+00> : vector<16xf32>
      %26 = vector.multi_reduction <add>, %25, %cst_18 [1] : vector<16x32xf32> to vector<16xf32>
      %27 = vector.shape_cast %26 : vector<16xf32> to vector<16x1xf32>
      %cst_19 = arith.constant 3.200000e+01 : f32
      %28 = vector.broadcast %cst_19 : f32 to vector<16x1xf32>
      %29 = arith.divf %27, %28 : vector<16x1xf32>
      %cst_20 = arith.constant 9.99999996E-13 : f32
      %30 = vector.broadcast %cst_20 : f32 to vector<16x1xf32>
      %31 = arith.addf %29, %30 : vector<16x1xf32>
      %32 = math.rsqrt %31 : vector<16x1xf32>
      %33 = vector.broadcast %32 : vector<16x1xf32> to vector<16x32xf32>
      %34 = arith.mulf %24, %33 : vector<16x32xf32>
      %c0_21 = arith.constant 0 : index
      %c0_22 = arith.constant 0 : index
      %35 = vector.load %arg6[%c0_21, %c0_22] : memref<1x32xf32, #tpu.memory_space<vmem>>, vector<1x32xf32>
      %36 = vector.broadcast %35 : vector<1x32xf32> to vector<16x32xf32>
      %37 = arith.mulf %34, %36 : vector<16x32xf32>
      %c0_23 = arith.constant 0 : index
      %c0_24 = arith.constant 0 : index
      %38 = vector.load %arg7[%c0_23, %c0_24] : memref<1x32xf32, #tpu.memory_space<vmem>>, vector<1x32xf32>
      %39 = vector.broadcast %38 : vector<1x32xf32> to vector<16x32xf32>
      %40 = arith.addf %37, %39 : vector<16x32xf32>
      %41 = arith.truncf %40 : vector<16x32xf32> to vector<16x32xbf16>
      %c0_25 = arith.constant 0 : index
      %c0_26 = arith.constant 0 : index
      %42 = vector.load %arg8[%c0_25, %c0_26] : memref<16x32xbf16, #tpu.memory_space<vmem>>, vector<16x32xbf16>
      tpu.vector_store %arg8[%c0_25, %c0_26], %41 {strides = array<i32>} : memref<16x32xbf16, #tpu.memory_space<vmem>>, vector<16x32xbf16>,
    } else {
    }
    return
  }
  func.func @transform_0(%arg0: i32, %arg1: i32) -> (i32, i32) {
    %c0_i32 = arith.constant 0 : i32
    return %arg0, %arg1 : i32, i32
  }
  func.func @transform_1(%arg0: i32, %arg1: i32) -> (i32, i32) {
    %c0_i32 = arith.constant 0 : i32
    %c0_i32_0 = arith.constant 0 : i32
    return %arg1, %c0_i32 : i32, i32
  }
  func.func @transform_2(%arg0: i32, %arg1: i32) -> (i32, i32) {
    %c0_i32 = arith.constant 0 : i32
    %c0_i32_0 = arith.constant 0 : i32
    %c0_i32_1 = arith.constant 0 : i32
    return %c0_i32, %c0_i32_0 : i32, i32
  }
  func.func @transform_3(%arg0: i32, %arg1: i32) -> (i32, i32) {
    %c0_i32 = arith.constant 0 : i32
    %c0_i32_0 = arith.constant 0 : i32
    return %arg0, %c0_i32 : i32, i32
  }
  func.func @transform_4(%arg0: i32, %arg1: i32) -> (i32, i32) {
    %c0_i32 = arith.constant 0 : i32
    %c0_i32_0 = arith.constant 0 : i32
    %c0_i32_1 = arith.constant 0 : i32
    return %c0_i32, %c0_i32_0 : i32, i32
  }
  func.func @transform_5(%arg0: i32, %arg1: i32) -> (i32, i32) {
    %c0_i32 = arith.constant 0 : i32
    %c0_i32_0 = arith.constant 0 : i32
    %c0_i32_1 = arith.constant 0 : i32
    return %c0_i32, %c0_i32_0 : i32, i32
  }
  func.func @transform_6(%arg0: i32, %arg1: i32) -> (i32, i32) {
    %c0_i32 = arith.constant 0 : i32
    %c0_i32_0 = arith.constant 0 : i32
    return %arg0, %c0_i32 : i32, i32
  }
}

module attributes {stable_mosaic.version = 11 : i64} {
  func.func @_pooler_head_kernel(%arg0: memref<2x32xbf16, #tpu.memory_space<vmem>>, %arg1: memref<32x32xbf16, #tpu.memory_space<vmem>>, %arg2: memref<1x32xf32, #tpu.memory_space<vmem>>, %arg3: memref<32x2xbf16, #tpu.memory_space<vmem>>, %arg4: memref<1x2xf32, #tpu.memory_space<vmem>>, %arg5: memref<1x2xf32, #tpu.memory_space<vmem>>, %arg6: memref<1x2xf32, #tpu.memory_space<vmem>>, %arg7: memref<1x2xf32, #tpu.memory_space<vmem>>, %arg8: memref<1x2xf32, #tpu.memory_space<vmem>>, %arg9: memref<2x2xf32, #tpu.memory_space<vmem>>) attributes {dimension_semantics = [], scalar_prefetch = 0 : i64, scratch_operands = 0 : i64, tpu.core_type = #tpu.core_type<tc>} {
    %c0 = arith.constant 0 : index
    %c0_0 = arith.constant 0 : index
    %0 = vector.load %arg0[%c0, %c0_0] : memref<2x32xbf16, #tpu.memory_space<vmem>>, vector<2x32xbf16>
    %c0_1 = arith.constant 0 : index
    %c0_2 = arith.constant 0 : index
    %1 = vector.load %arg1[%c0_1, %c0_2] : memref<32x32xbf16, #tpu.memory_space<vmem>>, vector<32x32xbf16>
    %cst = arith.constant dense<0.000000e+00> : vector<2x32xf32>
    %2 = tpu.matmul %0, %1, %cst {dimension_numbers = #tpu.dot_dimension_numbers<[1], [0], [0], [1], [0, 0, 1, 1], [], []>} : vector<2x32xbf16>, vector<32x32xbf16>, vector<2x32xf32> -> vector<2x32xf32>
    %c0_3 = arith.constant 0 : index
    %c0_4 = arith.constant 0 : index
    %3 = vector.load %arg2[%c0_3, %c0_4] : memref<1x32xf32, #tpu.memory_space<vmem>>, vector<1x32xf32>
    %4 = vector.broadcast %3 : vector<1x32xf32> to vector<2x32xf32>
    %5 = arith.addf %2, %4 : vector<2x32xf32>
    %6 = math.tanh %5 : vector<2x32xf32>
    %7 = arith.truncf %6 : vector<2x32xf32> to vector<2x32xbf16>
    %c0_5 = arith.constant 0 : index
    %c0_6 = arith.constant 0 : index
    %8 = vector.load %arg3[%c0_5, %c0_6] : memref<32x2xbf16, #tpu.memory_space<vmem>>, vector<32x2xbf16>
    %cst_7 = arith.constant dense<0.000000e+00> : vector<2x2xf32>
    %9 = tpu.matmul %7, %8, %cst_7 {dimension_numbers = #tpu.dot_dimension_numbers<[1], [0], [0], [1], [0, 0, 1, 1], [], []>} : vector<2x32xbf16>, vector<32x2xbf16>, vector<2x2xf32> -> vector<2x2xf32>
    %c0_8 = arith.constant 0 : index
    %c0_9 = arith.constant 0 : index
    %10 = vector.load %arg4[%c0_8, %c0_9] : memref<1x2xf32, #tpu.memory_space<vmem>>, vector<1x2xf32>
    %11 = vector.broadcast %10 : vector<1x2xf32> to vector<2x2xf32>
    %12 = arith.addf %9, %11 : vector<2x2xf32>
    %c0_10 = arith.constant 0 : index
    %c0_11 = arith.constant 0 : index
    %13 = vector.load %arg7[%c0_10, %c0_11] : memref<1x2xf32, #tpu.memory_space<vmem>>, vector<1x2xf32>
    %14 = vector.broadcast %13 : vector<1x2xf32> to vector<2x2xf32>
    %15 = arith.subf %12, %14 : vector<2x2xf32>
    %c0_12 = arith.constant 0 : index
    %c0_13 = arith.constant 0 : index
    %16 = vector.load %arg8[%c0_12, %c0_13] : memref<1x2xf32, #tpu.memory_space<vmem>>, vector<1x2xf32>
    %cst_14 = arith.constant 9.99999974E-6 : f32
    %17 = vector.broadcast %cst_14 : f32 to vector<1x2xf32>
    %18 = arith.addf %16, %17 : vector<1x2xf32>
    %19 = math.rsqrt %18 : vector<1x2xf32>
    %20 = vector.broadcast %19 : vector<1x2xf32> to vector<2x2xf32>
    %21 = arith.mulf %15, %20 : vector<2x2xf32>
    %c0_15 = arith.constant 0 : index
    %c0_16 = arith.constant 0 : index
    %22 = vector.load %arg5[%c0_15, %c0_16] : memref<1x2xf32, #tpu.memory_space<vmem>>, vector<1x2xf32>
    %23 = vector.broadcast %22 : vector<1x2xf32> to vector<2x2xf32>
    %24 = arith.mulf %21, %23 : vector<2x2xf32>
    %c0_17 = arith.constant 0 : index
    %c0_18 = arith.constant 0 : index
    %25 = vector.load %arg6[%c0_17, %c0_18] : memref<1x2xf32, #tpu.memory_space<vmem>>, vector<1x2xf32>
    %26 = vector.broadcast %25 : vector<1x2xf32> to vector<2x2xf32>
    %27 = arith.addf %24, %26 : vector<2x2xf32>
    %cst_19 = arith.constant dense<0xFF800000> : vector<2xf32>
    %28 = vector.multi_reduction <maximumf>, %27, %cst_19 [1] : vector<2x2xf32> to vector<2xf32>
    %29 = vector.shape_cast %28 : vector<2xf32> to vector<2x1xf32>
    %30 = vector.broadcast %29 : vector<2x1xf32> to vector<2x2xf32>
    %31 = arith.subf %27, %30 : vector<2x2xf32>
    %32 = math.exp %31 : vector<2x2xf32>
    %cst_20 = arith.constant dense<0.000000e+00> : vector<2xf32>
    %33 = vector.multi_reduction <add>, %32, %cst_20 [1] : vector<2x2xf32> to vector<2xf32>
    %34 = vector.shape_cast %33 : vector<2xf32> to vector<2x1xf32>
    %35 = tpu.reciprocal %34 : vector<2x1xf32> -> vector<2x1xf32>
    %36 = vector.broadcast %35 : vector<2x1xf32> to vector<2x2xf32>
    %37 = arith.mulf %32, %36 : vector<2x2xf32>
    %c0_21 = arith.constant 0 : index
    %c0_22 = arith.constant 0 : index
    %38 = vector.load %arg9[%c0_21, %c0_22] : memref<2x2xf32, #tpu.memory_space<vmem>>, vector<2x2xf32>
    tpu.vector_store %arg9[%c0_21, %c0_22], %37 {strides = array<i32>} : memref<2x2xf32, #tpu.memory_space<vmem>>, vector<2x2xf32>,
    return
  }
}

</mosaic_0001>

<bundles_post_ra>
// kernel: bert_for_classification_forward.12
= control target key start
LH: loop header
LB: loop body
LE: loop exit
PB: predicated region body
PF: predicated region fallthrough
CT: control target
= control target key end

     0   :  { %vm18_vm0 = vcmask 261120   ;;  %vm72_vm1 = vcmask 257024   ;;  %s132_s0 = inlined_call_operand.vmem [shape: bf16[16,32], index: 0, kind: input, shape index: {}]   ;;  %s133_s1 = inlined_call_operand.vmem [shape: f32[1,32], index: 1, kind: input, shape index: {}]   ;;  %s134_s2 = inlined_call_operand.vmem [shape: f32[1,32], index: 2, kind: input, shape index: {}]   ;;  %s135_s3 = inlined_call_operand.vmem [shape: bf16[16,32], index: 3, kind: output, shape index: {}]  }
   0x1   :  { %v86_v0 = vld [vmem:[%s132_s0] sm:$0xff]  }
   0x2   :  { %v87_v1 = vunpack.c.l.bf16 %v86_v0  ;;  %v88_v2 = vunpack.c.h.bf16 %v86_v0  ;;  %v79_v22 = vld [vmem:[%s133_s1] ss:$0 sm:$0xff] }
   0x3   :  { %v80_v24 = vld [vmem:[%s134_s2] ss:$0 sm:$0xff] }
   0x4   :  { %v19_v3 = vsel %vm18_vm0, %v87_v1, 0.0  ;;  %v22_v4 = vsel %vm18_vm0, %v88_v2, 0.0 }
   0x5   :  { %20 = vadd.xlane.f32.xlu0 %v19_v3 }
   0x9   :  { %23 = vadd.xlane.f32.xlu0 %v22_v4 }
  0x92   :  { %v21_v5 = vpop.xlane.xlu0 %20 }
  0x93   :  { %v26_v6 = vmul.f32 0.03125, %v21_v5 }
  0x95   :  { %v28_v7 = vsub.f32 %v87_v1, %v26_v6 }
  0x96   :  { %v24_v8 = vpop.xlane.xlu0 %23 }
  0x97   :  { %v27_v9 = vmul.f32 0.03125, %v24_v8  ;;  %v30_v10 = vmul.f32 %v28_v7, %v28_v7 }
  0x99   :  { %v29_v11 = vsub.f32 %v88_v2, %v27_v9  ;;  %v32_v12 = vsel %vm18_vm0, %v30_v10, 0.0 }
  0x9a   :  { %33 = vadd.xlane.f32.xlu1 %v32_v12 }
  0x9b   :  { %v31_v13 = vmul.f32 %v29_v11, %v29_v11 }
  0x9d   :  { %v35_v14 = vsel %vm18_vm0, %v31_v13, 0.0 }
  0x9e   :  { %36 = vadd.xlane.f32.xlu1 %v35_v14 }
 0x127   :  { %v34_v15 = vpop.xlane.xlu1 %33 }
 0x128   :  { %v38_v16 = vmul.f32 0.03125, %v34_v15 }
 0x12a   :  { %v40_v17 = vadd.f32 1e-12, %v38_v16 }
 0x12b   :  { %v37_v18 = vpop.xlane.xlu1 %36 }
 0x12c   :  { %89 = vrsqrt.f32 %v40_v17  ;;  %v39_v19 = vmul.f32 0.03125, %v37_v18 }
 0x12e   :  { %v41_v20 = vadd.f32 1e-12, %v39_v19 }
 0x130   :  { %91 = vrsqrt.f32 %v41_v20 }
 0x136   :  { %v90_v21 = vpop.eup %89 }
 0x137   :  { %v44_v23 = vmul.f32 %v90_v21, %v28_v7 }
 0x139   :  { %v53_v25 = vmul.f32 %v79_v22, %v44_v23 }
 0x13a   :  { %v92_v26 = vpop.eup %91 }
 0x13b   :  { %v62_v27 = vadd.f32 %v80_v24, %v53_v25  ;;  %v45_v28 = vmul.f32 %v92_v26, %v29_v11 }
 0x13d   :  { %v83_v29 = vpack.c.bf16 %v62_v27, %v62_v27  ;;  %v54_v30 = vmul.f32 %v79_v22, %v45_v28 }
 0x13f   :  { %73 = vst.msk [vmem:[%s135_s3] sm:$0xf] %vm72_vm1, %v83_v29  ;;  %v63_v31 = vadd.f32 %v80_v24, %v54_v30 }
 0x141   :  { %v84_v32 = vpack.c.bf16 %v63_v31, %v63_v31 }
 0x143   :  { %74 = vst.msk [vmem:[%s135_s3 + $0x4] sm:$0xf] %vm72_vm1, %v84_v32 }

// kernel: bert_for_classification_forward.13
= control target key start
LH: loop header
LB: loop body
LE: loop exit
PB: predicated region body
PF: predicated region fallthrough
CT: control target
= control target key end

     0   :  { %vm19_vm0 = vcmask 785408   ;;  %v151_v0 = vmov 0.0   ;;  %vm152_vm1 = vmmov 0   ;;  %vm47_vm2 = vcmask 261120   ;;  %s195_s1 = inlined_call_operand.vmem [shape: bf16[32,96], index: 1, kind: input, shape index: {}]   ;;  %s196_s0 = inlined_call_operand.vmem [shape: bf16[16,32], index: 0, kind: input, shape index: {}]   ;;  %s197_s2 = inlined_call_operand.vmem [shape: f32[1,96], index: 2, kind: input, shape index: {}]   ;;  %s198_s3 = inlined_call_operand.vmem [shape: bf16[16,96], index: 3, kind: output, shape index: {}]  }
   0x1   :  { %138 = vmatprep.subr.bf16.mxu0 %v151_v0  ;;  %v148_v1 = vld [vmem:[%s195_s1] sm:$0xff]   ;;  %142 = vmatprep.mubr.msk.bf16.mxu0 %vm152_vm1, %v151_v0  ;;  %20 = vst.msk [vmem:[#allocation2] sm:$0xff] %vm19_vm0, %v151_v0  ;;  %21 = vst.msk [vmem:[#allocation2 + $0x8] sm:$0xff] %vm19_vm0, %v151_v0  ;;  %v149_v2 = vld [vmem:[%s195_s1 + $0x8] sm:$0xff]   ;;  %vm119_vm3 = vcmask 781312  }
   0x2   :  { %139 = vmatpush3.bf16.msra.mxu0 %v148_v1  ;;  %v150_v3 = vld [vmem:[%s196_s0] sm:$0xff]  }
   0x3   :  { %140 = vmatprep.subr.bf16.mxu0 %v151_v0  ;;  %v130_v12 = vld [vmem:[%s197_s2] ss:$0 sm:$0xff] }
   0x6   :  { %141 = vmatpush3.bf16.msra.mxu0 %v149_v2 }
   0x8   :  { %v22_v4 = vld [vmem:[#allocation2] sm:$0xff]  ;;  %v23_v6 = vld [vmem:[#allocation2 + $0x8] sm:$0xff] }
   0x9   :  { %143 = vmatmul.mubr.msk.bf16.vlgmr.msra.gmra.mrb[0].mxu0 %vm47_vm2, %v150_v3 }
  0xdc   :  { %v85_v5 = vpop.f32.mrb[0].mxu0 }
  0xdd   :  { %v92_v7 = vadd.f32 %v85_v5, %v22_v4  ;;  %v144_v8 = vpop.f32.mrb[1].mxu0 }
  0xde   :  { %v88_v9 = vpop.f32.mrb[2].mxu0 }
  0xdf   :  { %95 = vst.msk [vmem:[#allocation2] sm:$0xff] %vm19_vm0, %v92_v7  ;;  %v93_v10 = vadd.f32 %v88_v9, %v23_v6  ;;  %v145_v11 = vpop.f32.mrb[3].mxu0 }
  0xe1   :  { %96 = vst.msk [vmem:[#allocation2 + $0x8] sm:$0xff] %vm19_vm0, %v93_v10 }
  0xe6   :  { %v100_v13 = vld [vmem:[#allocation2] sm:$0xff] }
  0xe7   :  { %v109_v14 = vadd.f32 %v130_v12, %v100_v13 }
  0xe8   :  { %v101_v15 = vld [vmem:[#allocation2 + $0x8] sm:$0xff] }
  0xe9   :  { %v133_v16 = vpack.c.bf16 %v109_v14, %v109_v14  ;;  %v110_v17 = vadd.f32 %v130_v12, %v101_v15 }
  0xeb   :  { %120 = vst.msk [vmem:[%s198_s3] sm:$0xf] %vm119_vm3, %v133_v16  ;;  %v134_v18 = vpack.c.bf16 %v110_v17, %v110_v17 }
  0xed   :  { %121 = vst.msk [vmem:[%s198_s3 + $0x4] sm:$0xf] %vm119_vm3, %v134_v18 }

// kernel: bert_for_classification_forward.15
= control target key start
LH: loop header
LB: loop body
LE: loop exit
PB: predicated region body
PF: predicated region fallthrough
CT: control target
= control target key end

     0   :  { %vm28_vm0 = vcmask 261120   ;;  %v220_v0 = vmov 0.0   ;;  %vm221_vm1 = vmmov 0   ;;  %vm178_vm2 = vcmask 257024   ;;  %s293_s1 = inlined_call_operand.vmem [shape: bf16[32,32], index: 1, kind: input, shape index: {}]   ;;  %s294_s0 = inlined_call_operand.vmem [shape: bf16[16,32], index: 0, kind: input, shape index: {}]   ;;  %s295_s3 = inlined_call_operand.vmem [shape: bf16[16,32], index: 3, kind: input, shape index: {}]   ;;  %s296_s2 = inlined_call_operand.vmem [shape: f32[1,32], index: 2, kind: input, shape index: {}]   ;;  %s297_s4 = inlined_call_operand.vmem [shape: f32[1,32], index: 4, kind: input, shape index: {}]   ;;  %s298_s5 = inlined_call_operand.vmem [shape: f32[1,32], index: 5, kind: input, shape index: {}]   ;;  %s299_s6 = inlined_call_operand.vmem [shape: bf16[16,32], index: 6, kind: output, shape index: {}]  }
   0x1   :  { %203 = vmatprep.subr.bf16.mxu0 %v220_v0  ;;  %v213_v1 = vld [vmem:[%s293_s1] sm:$0xff]   ;;  %207 = vmatprep.mubr.msk.bf16.mxu0 %vm221_vm1, %v220_v0  ;;  %29 = vst.msk [vmem:[#allocation2] sm:$0xff] %vm28_vm0, %v220_v0  ;;  %30 = vst.msk [vmem:[#allocation2 + $0x8] sm:$0xff] %vm28_vm0, %v220_v0  ;;  %v214_v2 = vld [vmem:[%s293_s1 + $0x8] sm:$0xff]  }
   0x2   :  { %204 = vmatpush3.bf16.msra.mxu0 %v213_v1  ;;  %v215_v3 = vld [vmem:[%s294_s0] sm:$0xff]  }
   0x3   :  { %205 = vmatprep.subr.bf16.mxu0 %v220_v0  ;;  %v197_v12 = vld [vmem:[%s295_s3] sm:$0xff]  }
   0x4   :  { %v189_v13 = vld [vmem:[%s296_s2] ss:$0 sm:$0xff]  ;;  %v198_v14 = vunpack.c.l.bf16 %v197_v12  ;;  %v199_v17 = vunpack.c.h.bf16 %v197_v12 }
   0x5   :  { %v190_v41 = vld [vmem:[%s297_s4] ss:$0 sm:$0xff] }
   0x6   :  { %206 = vmatpush3.bf16.msra.mxu0 %v214_v2  ;;  %v191_v43 = vld [vmem:[%s298_s5] ss:$0 sm:$0xff] }
   0x8   :  { %v31_v4 = vld [vmem:[#allocation2] sm:$0xff]  ;;  %v32_v6 = vld [vmem:[#allocation2 + $0x8] sm:$0xff] }
   0x9   :  { %208 = vmatmul.mubr.msk.bf16.vlgmr.msra.gmra.mrb[0].mxu0 %vm28_vm0, %v215_v3 }
  0xdc   :  { %v94_v5 = vpop.f32.mrb[0].mxu0 }
  0xdd   :  { %v101_v7 = vadd.f32 %v94_v5, %v31_v4  ;;  %v209_v8 = vpop.f32.mrb[1].mxu0 }
  0xde   :  { %v97_v9 = vpop.f32.mrb[2].mxu0 }
  0xdf   :  { %103 = vst.msk [vmem:[#allocation2] sm:$0xff] %vm28_vm0, %v101_v7  ;;  %v102_v10 = vadd.f32 %v97_v9, %v32_v6  ;;  %v210_v11 = vpop.f32.mrb[3].mxu0 }
  0xe1   :  { %104 = vst.msk [vmem:[#allocation2 + $0x8] sm:$0xff] %vm28_vm0, %v102_v10 }
  0xe6   :  { %v108_v15 = vld [vmem:[#allocation2] sm:$0xff] }
  0xe7   :  { %v117_v16 = vadd.f32 %v189_v13, %v108_v15 }
  0xe8   :  { %v109_v18 = vld [vmem:[#allocation2 + $0x8] sm:$0xff] }
  0xe9   :  { %v123_v19 = vadd.f32 %v198_v14, %v117_v16  ;;  %v118_v20 = vadd.f32 %v189_v13, %v109_v18 }
  0xeb   :  { %v125_v21 = vsel %vm28_vm0, %v123_v19, 0.0  ;;  %v124_v22 = vadd.f32 %v199_v17, %v118_v20 }
  0xec   :  { %126 = vadd.xlane.f32.xlu0 %v125_v21 }
  0xed   :  { %v128_v23 = vsel %vm28_vm0, %v124_v22, 0.0 }
  0xf0   :  { %129 = vadd.xlane.f32.xlu0 %v128_v23 }
 0x179   :  { %v127_v24 = vpop.xlane.xlu0 %126 }
 0x17a   :  { %v132_v25 = vmul.f32 0.03125, %v127_v24 }
 0x17c   :  { %v134_v26 = vsub.f32 %v123_v19, %v132_v25 }
 0x17d   :  { %v130_v27 = vpop.xlane.xlu0 %129 }
 0x17e   :  { %v133_v28 = vmul.f32 0.03125, %v130_v27  ;;  %v136_v29 = vmul.f32 %v134_v26, %v134_v26 }
 0x180   :  { %v135_v30 = vsub.f32 %v124_v22, %v133_v28  ;;  %v138_v31 = vsel %vm28_vm0, %v136_v29, 0.0 }
 0x181   :  { %139 = vadd.xlane.f32.xlu1 %v138_v31 }
 0x182   :  { %v137_v32 = vmul.f32 %v135_v30, %v135_v30 }
 0x184   :  { %v141_v33 = vsel %vm28_vm0, %v137_v32, 0.0 }
 0x185   :  { %142 = vadd.xlane.f32.xlu1 %v141_v33 }
 0x20e   :  { %v140_v34 = vpop.xlane.xlu1 %139 }
 0x20f   :  { %v144_v35 = vmul.f32 0.03125, %v140_v34 }
 0x211   :  { %v146_v36 = vadd.f32 1e-12, %v144_v35 }
 0x212   :  { %v143_v37 = vpop.xlane.xlu1 %142 }
 0x213   :  { %216 = vrsqrt.f32 %v146_v36  ;;  %v145_v38 = vmul.f32 0.03125, %v143_v37 }
 0x215   :  { %v147_v39 = vadd.f32 1e-12, %v145_v38 }
 0x217   :  { %218 = vrsqrt.f32 %v147_v39 }
 0x21d   :  { %v217_v40 = vpop.eup %216 }
 0x21e   :  { %v150_v42 = vmul.f32 %v217_v40, %v134_v26 }
 0x220   :  { %v159_v44 = vmul.f32 %v190_v41, %v150_v42 }
 0x221   :  { %v219_v45 = vpop.eup %218 }
 0x222   :  { %v168_v46 = vadd.f32 %v191_v43, %v159_v44  ;;  %v151_v47 = vmul.f32 %v219_v45, %v135_v30 }
 0x224   :  { %v194_v48 = vpack.c.bf16 %v168_v46, %v168_v46  ;;  %v160_v49 = vmul.f32 %v190_v41, %v151_v47 }
 0x226   :  { %179 = vst.msk [vmem:[%s299_s6] sm:$0xf] %vm178_vm2, %v194_v48  ;;  %v169_v50 = vadd.f32 %v191_v43, %v160_v49 }
 0x228   :  { %v195_v51 = vpack.c.bf16 %v169_v50, %v169_v50 }
 0x22a   :  { %180 = vst.msk [vmem:[%s299_s6 + $0x4] sm:$0xf] %vm178_vm2, %v195_v51 }

// kernel: bert_for_classification_forward.14
= control target key start
LH: loop header
LB: loop body
LE: loop exit
PB: predicated region body
PF: predicated region fallthrough
CT: control target
= control target key end

     0   :  { %s901_s9 = smov 0   ;;  %s1007_s0 = inlined_call_operand.vmem [shape: bf16[2,8,96], index: 0, kind: input, shape index: {}]   ;;  %s1008_s1 = inlined_call_operand.vmem [shape: f32[2,1,8], index: 1, kind: input, shape index: {}]   ;;  %s1009_s2 = inlined_call_operand.vmem [shape: bf16[2,8,32], index: 2, kind: output, shape index: {}]  }
   0x1 LB: > { %s723_s10 = sadd.s32 4294967295, %s868_s9   ;;  %p727_p0 = scmp.ge.s32.totalorder %s868_s9, 1  ;;  %s868_s9 = sphi %s901_s9, %s12_s9  }
   0x2   : > { %p119_p1 = scmp.lt.s32.totalorder %s868_s9, 3 }
   0x4   : > { %p120_p2 = pnand %p727_p0, %p119_p1 }
   0x5   : > { %p142_p3 = scmp.lt.s32.totalorder (!%p120_p2), %s723_s10, 1  ;;  %v870_v0 = vmov (!%p120_p2), 0.0   ;;  %vm871_vm0 = vmmov (!%p120_p2), 0   ;;  %s872_s15 = smov (!%p120_p2), 96   ;;  %vm169_vm1 = vcmask (!%p120_p2), 64512   ;;  %vm233_vm2 = vcmask (!%p120_p2), 1043456  }
   0x6   : > { %123 = sbr.rel (%p120_p2) target bundleno = 1601 (0x641), region = 28  ;;  %770 = vmatprep.subr.bf16.mxu0 (!%p120_p2), %v870_v0  ;;  %772 = vmatprep.mubr.msk.bf16.mxu0 (!%p120_p2), %vm871_vm0, %v870_v0  ;;  %s873_s16 = smov (!%p120_p2), 64   ;;  %vm278_vm3 = vcmask (!%p120_p2), 60416   ;;  %vm405_vm4 = vcmask (!%p120_p2), 126016   ;;  %vm532_vm5 = vcmask (!%p120_p2), 191616   ;;  %vm659_vm6 = vcmask (!%p120_p2), 257216  }
   0x7   : > { %776 = vmatprep.subr.bf16.mxu1 (!%p120_p2), %v870_v0  ;;  %778 = vmatprep.mubr.msk.bf16.mxu1 (!%p120_p2), %vm871_vm0, %v870_v0  ;;  %s874_s17 = smov (!%p120_p2), 88   ;;  %s875_s21 = smov (!%p120_p2), 72  }
   0x8   : > { %s876_s22 = smov (!%p120_p2), 120   ;;  %s877_s23 = smov (!%p120_p2), 80  }
   0x9   : > { %s878_s24 = smov (!%p120_p2), 112   ;;  %s879_s25 = smov (!%p120_p2), 104  }
   0xa   : > { %s880_s29 = smov (!%p120_p2), 56   ;;  %s881_s30 = smov (!%p120_p2), 48  }
   0xb   : > { %s882_s3 = smov (!%p120_p2), 40   ;;  %s883_s4 = smov (!%p120_p2), 8  }
   0xc   : > { %s884_s5 = smov (!%p120_p2), 16   ;;  %s885_s6 = smov (!%p120_p2), 24  }
   0xd   : > { %s1011_s10 = smov (!%p142_p3, %s723_s10), 1 }
   0xe   : > { %s728_s11 = sshll.u32 %s1011_s10, 2  ;;  %s148_s20 = scalar_lea.vmem %s1008_s1, %s1011_s10 }
   0xf   : > { %s923_s14 = scalar_lea.vmem %s1007_s0, %s728_s11  ;;  %v939_v8 = vld [vmem:[%s148_s20] ss:$0 sm:$0xff]  ;;  %s974_s28 = scalar_lea.vmem %s1009_s2, %s728_s11 }
  0x10   : > { %v156_v1 = vld [vmem:[%s923_s14] sm:$0xf] }
  0x11   : > { %v731_v2 = vcombine.low %v156_v1, %v156_v1  ;;  %v157_v5 = vmul.bf16 1052065461, %v156_v1  ;;  %v280_v6 = vld [vmem:[%s923_s14] sm:$0xf] }
  0x12   : > { %v932_v7 = vcombine.low %v280_v6, %v280_v6  ;;  %v534_v15 = vld [vmem:[%s923_s14] sm:$0xf]  ;;  %v281_v24 = vmul.bf16 1052065461, %v280_v6 }
  0x13   : > { %167 = vrot.lane.b32.xlu0 %v731_v2, %s872_s15  ;;  %228 = vrot.lane.b32.xlu1 %v731_v2, %s873_s16  ;;  %v944_v16 = vcombine.low %v534_v15, %v534_v15  ;;  %v407_v26 = vld [vmem:[%s923_s14] sm:$0xf]  ;;  %v535_v30 = vmul.bf16 1052065461, %v534_v15 }
  0x14   : > { %v734_v25 = vcombine.low %v281_v24, %v281_v24  ;;  %v951_v27 = vcombine.low %v407_v26, %v407_v26  ;;  %v408_v28 = vmul.bf16 1052065461, %v407_v26 }
  0x15   : > { %v744_v31 = vcombine.low %v535_v30, %v535_v30 }
  0x16   : > { %v739_v29 = vcombine.low %v408_v28, %v408_v28 }
  0x17   : > { %290 = vrot.lane.b32.xlu1 %v932_v7, %s874_s17 }
  0x85   : > { %v168_v3 = vpop.permute.xlu0 %167  ;;  %v229_v17 = vpop.permute.xlu1 %228 }
  0x86   : > { %v174_v4 = vsel %vm169_vm1, %v168_v3, 0  ;;  %v235_v18 = vsel %vm233_vm2, %v229_v17, 0 }
  0x87   : > { %771 = vmatpush3.bf16.xpose.msra.mxu0 %v174_v4  ;;  %777 = vmatpush3.bf16.msra.mxu1 %v235_v18 }
  0x88   : > { %788 = vmatprep.subr.bf16.mxu0 %v870_v0  ;;  %782 = vmatprep.subr.bf16.mxu1 %v870_v0 }
  0x89   : > { %v291_v32 = vpop.permute.xlu1 %290 }
  0x8a   : > { %v296_v38 = vsel %vm169_vm1, %v291_v32, 0 }
  0x8e   : > { %773 = vmatmul.mubr.msk.bf16.vlgmr.msra.gmra.mrb[0].mxu0 %vm169_vm1, %v157_v5 }
  0x8f   : > { %790 = vmatprep.mubr.msk.bf16.mxu0 %vm871_vm0, %v870_v0 }
 0x161   : > { %v210_v9 = vpop.f32.mrb[0].mxu0 }
 0x162   : > { %v211_v10 = vadd.f32 %v939_v8, %v210_v9  ;;  %v774_v11 = vpop.f32.mrb[1].mxu0 }
 0x163   : > { %v213_v12 = vpop.f32.mrb[2].mxu0 }
 0x164   : > { %v775_v13 = vpop.f32.mrb[3].mxu0  ;;  %v216_v14 = vsel %vm169_vm1, %v211_v10, -inf }
 0x165   : > { %217 = vmax.xlane.f32.xlu0 %v216_v14 }
 0x17b   : > { %544 = vrot.lane.b32.xlu0 %v944_v16, %s875_s21 }
 0x1f2   : > { %v218_v19 = vpop.xlane.xlu0 %217 }
 0x1f3   : > { %v219_v20 = vsub.f32 %v211_v10, %v218_v19 }
 0x1f5   : > { %v220_v21 = vmul.f32 1.442695, %v219_v20 }
 0x1f6   : > { %v545_v41 = vpop.permute.xlu0 %544 }
 0x1f7   : > { %846 = vpow2.f32 %v220_v21  ;;  %v550_v43 = vsel %vm169_vm1, %v545_v41, 0 }
 0x201   : > { %v847_v22 = vpop.eup %846 }
 0x202   : > { %v222_v23 = vsel %vm169_vm1, %v847_v22, 0.0 }
 0x203   : > { %223 = vadd.xlane.f32.xlu1 %v222_v23 }
 0x214   : > { %285 = vrot.lane.b32.xlu1 %v734_v25, %s876_s22 }
 0x218   : > { %417 = vrot.lane.b32.xlu1 %v951_v27, %s877_s23 }
 0x21c   : > { %412 = vrot.lane.b32.xlu1 %v739_v29, %s878_s24 }
 0x220   : > { %539 = vrot.lane.b32.xlu1 %v744_v31, %s879_s25 }
 0x290   : > { %v224_v33 = vpop.xlane.xlu1 %223 }
 0x291   : > { %848 = vrcp.f32 %v224_v33 }
 0x294   : > { %v286_v36 = vpop.permute.xlu1 %285 }
 0x298   : > { %v418_v39 = vpop.permute.xlu1 %417 }
 0x299   : > { %v423_v40 = vsel %vm169_vm1, %v418_v39, 0 }
 0x29b   : > { %v849_v34 = vpop.eup %848 }
 0x29c   : > { %v226_v35 = vmul.f32 %v849_v34, %v847_v22  ;;  %v413_v42 = vpop.permute.xlu1 %412 }
 0x29e   : > { %v227_v37 = vpack.c.bf16 %v226_v35, %v226_v35 }
 0x2a0   : > { %779 = vmatmul.mubr.msk.bf16.vlgmr.msra.gmra.mrb[0].mxu1 %vm169_vm1, %v227_v37  ;;  %v540_v44 = vpop.permute.xlu1 %539 }
 0x2a1   : > { %783 = vmatpush3.bf16.xpose.msra.mxu1 %v296_v38  ;;  %784 = vmatprep.mubr.msk.bf16.mxu1 %vm871_vm0, %v870_v0 }
 0x2a2   : > { %794 = vmatprep.subr.bf16.mxu1 %v870_v0 }
 0x2a8   : > { %785 = vmatmul.mubr.msk.bf16.vlgmr.msra.gmra.mrb[4].mxu1 %vm169_vm1, %v286_v36 }
 0x2a9   : > { %795 = vmatpush3.bf16.xpose.msra.mxu1 %v423_v40  ;;  %796 = vmatprep.mubr.msk.bf16.mxu1 %vm871_vm0, %v870_v0 }
 0x2aa   : > { %806 = vmatprep.subr.bf16.mxu1 %v870_v0 }
 0x2b0   : > { %797 = vmatmul.mubr.msk.bf16.vlgmr.msra.gmra.mrb[8].mxu1 %vm169_vm1, %v413_v42 }
 0x2b1   : > { %807 = vmatpush3.bf16.xpose.msra.mxu1 %v550_v43  ;;  %808 = vmatprep.mubr.msk.bf16.mxu1 %vm871_vm0, %v870_v0 }
 0x2b8   : > { %809 = vmatmul.mubr.msk.bf16.vlgmr.msra.gmra.mrb[12].mxu1 %vm169_vm1, %v540_v44 }
 0x373   : > { %v271_v45 = vpop.f32.mrb[0].mxu1 }
 0x374   : > { %v277_v46 = vpack.c.bf16 %v271_v45, %v271_v45  ;;  %v780_v47 = vpop.f32.mrb[1].mxu1 }
 0x375   : > { %v274_v48 = vpop.f32.mrb[2].mxu1 }
 0x376   : > { %279 = vst.msk [vmem:[%s974_s28] sm:$0xf] %vm278_vm3, %v277_v46  ;;  %v781_v49 = vpop.f32.mrb[3].mxu1 }
 0x37b   : > { %v332_v50 = vpop.f32.mrb[4].mxu1 }
 0x37c   : > { %v333_v51 = vadd.f32 %v939_v8, %v332_v50  ;;  %v786_v52 = vpop.f32.mrb[5].mxu1 }
 0x37d   : > { %v335_v53 = vpop.f32.mrb[6].mxu1 }
 0x37e   : > { %v787_v54 = vpop.f32.mrb[7].mxu1  ;;  %v338_v55 = vsel %vm169_vm1, %v333_v51, -inf }
 0x37f   : > { %339 = vmax.xlane.f32.xlu1 %v338_v55 }
 0x383   : > { %v459_v56 = vpop.f32.mrb[8].mxu1 }
 0x384   : > { %v460_v57 = vadd.f32 %v939_v8, %v459_v56  ;;  %v798_v58 = vpop.f32.mrb[9].mxu1 }
 0x385   : > { %v462_v59 = vpop.f32.mrb[10].mxu1 }
 0x386   : > { %v465_v60 = vsel %vm169_vm1, %v460_v57, -inf  ;;  %v799_v61 = vpop.f32.mrb[11].mxu1 }
 0x387   : > { %466 = vmax.xlane.f32.xlu0 %v465_v60 }
 0x38b   : > { %v586_v62 = vpop.f32.mrb[12].mxu1 }
 0x38c   : > { %v587_v63 = vadd.f32 %v939_v8, %v586_v62  ;;  %v810_v1 = vpop.f32.mrb[13].mxu1 }
 0x38d   : > { %v589_v2 = vpop.f32.mrb[14].mxu1 }
 0x38e   : > { %v592_v3 = vsel %vm169_vm1, %v587_v63, -inf  ;;  %v811_v4 = vpop.f32.mrb[15].mxu1 }
 0x38f   : > { %593 = vmax.xlane.f32.xlu1 %v592_v3 }
 0x40c   : > { %v340_v5 = vpop.xlane.xlu1 %339 }
 0x40d   : > { %v341_v6 = vsub.f32 %v333_v51, %v340_v5 }
 0x40f   : > { %v342_v9 = vmul.f32 1.442695, %v341_v6 }
 0x411   : > { %850 = vpow2.f32 %v342_v9 }
 0x414   : > { %v467_v17 = vpop.xlane.xlu0 %466 }
 0x415   : > { %v468_v18 = vsub.f32 %v460_v57, %v467_v17 }
 0x417   : > { %v469_v19 = vmul.f32 1.442695, %v468_v18 }
 0x41b   : > { %v851_v10 = vpop.eup %850 }
 0x41c   : > { %v594_v11 = vpop.xlane.xlu1 %593  ;;  %v344_v12 = vsel %vm169_vm1, %v851_v10, 0.0 }
 0x41d   : > { %v595_v13 = vsub.f32 %v587_v63, %v594_v11  ;;  %345 = vadd.xlane.f32.xlu1 %v344_v12 }
 0x41f   : > { %v596_v14 = vmul.f32 1.442695, %v595_v13 }
 0x421   : > { %852 = vpow2.f32 %v596_v14 }
 0x422   : > { %854 = vpow2.f32 %v469_v19 }
 0x42b   : > { %v853_v15 = vpop.eup %852 }
 0x42c   : > { %v598_v8 = vsel %vm169_vm1, %v853_v15, 0.0  ;;  %v855_v20 = vpop.eup %854 }
 0x42d   : > { %599 = vadd.xlane.f32.xlu0 %v598_v8  ;;  %v471_v21 = vsel %vm169_vm1, %v855_v20, 0.0 }
 0x42e   : > { %350 = vrot.lane.b32.xlu1 %v932_v7, %s880_s29 }
 0x443   : > { %477 = vrot.lane.b32.xlu0 %v951_v27, %s881_s30 }
 0x452   : > { %472 = vadd.xlane.f32.xlu1 %v471_v21 }
 0x463   : > { %604 = vrot.lane.b32.xlu1 %v944_v16, %s882_s3 }
 0x4aa   : > { %v346_v22 = vpop.xlane.xlu1 %345 }
 0x4ab   : > { %856 = vrcp.f32 %v346_v22 }
 0x4ae   : > { %v351_v23 = vpop.permute.xlu1 %350 }
 0x4af   : > { %v356_v24 = vsel %vm233_vm2, %v351_v23, 0 }
 0x4b0   : > { %789 = vmatpush3.bf16.msra.mxu0 %v356_v24 }
 0x4b1   : > { %800 = vmatprep.subr.bf16.mxu0 %v870_v0 }
 0x4b5   : > { %v857_v7 = vpop.eup %856 }
 0x4b6   : > { %v348_v25 = vmul.f32 %v857_v7, %v851_v10 }
 0x4b8   : > { %v349_v26 = vpack.c.bf16 %v348_v25, %v348_v25 }
 0x4ba   : > { %791 = vmatmul.mubr.msk.bf16.vlgmr.msra.gmra.mrb[4].mxu0 %vm169_vm1, %v349_v26  ;;  %v600_v27 = vpop.xlane.xlu0 %599 }
 0x4bb   : > { %802 = vmatprep.mubr.msk.bf16.mxu0 %vm871_vm0, %v870_v0 }
 0x4be   : > { %v478_v28 = vpop.permute.xlu0 %477 }
 0x4bf   : > { %v483_v16 = vsel %vm233_vm2, %v478_v28, 0 }
 0x4c0   : > { %801 = vmatpush3.bf16.msra.mxu0 %v483_v16 }
 0x4c1   : > { %812 = vmatprep.subr.bf16.mxu0 %v870_v0 }
 0x4df   : > { %v473_v29 = vpop.xlane.xlu1 %472 }
 0x4e0   : > { %858 = vrcp.f32 %v473_v29 }
 0x4e1   : > { %860 = vrcp.f32 %v600_v27 }
 0x4e3   : > { %v605_v31 = vpop.permute.xlu1 %604 }
 0x4e4   : > { %v610_v33 = vsel %vm233_vm2, %v605_v31, 0 }
 0x4ea   : > { %v859_v30 = vpop.eup %858 }
 0x4eb   : > { %v475_v32 = vmul.f32 %v859_v30, %v855_v20  ;;  %v861_v35 = vpop.eup %860 }
 0x4ec   : > { %v602_v36 = vmul.f32 %v861_v35, %v853_v15 }
 0x4ed   : > { %v476_v34 = vpack.c.bf16 %v475_v32, %v475_v32 }
 0x4ee   : > { %v603_v37 = vpack.c.bf16 %v602_v36, %v602_v36 }
 0x4ef   : > { %803 = vmatmul.mubr.msk.bf16.vlgmr.msra.gmra.mrb[8].mxu0 %vm169_vm1, %v476_v34 }
 0x4f0   : > { %813 = vmatpush3.bf16.msra.mxu0 %v610_v33  ;;  %814 = vmatprep.mubr.msk.bf16.mxu0 %vm871_vm0, %v870_v0 }
 0x4f7   : > { %815 = vmatmul.mubr.msk.bf16.vlgmr.msra.gmra.mrb[12].mxu0 %vm169_vm1, %v603_v37 }
 0x58d   : > { %v392_v38 = vpop.f32.mrb[4].mxu0 }
 0x58e   : > { %v751_v39 = vpack.c.bf16 %v392_v38, %v392_v38  ;;  %v792_v40 = vpop.f32.mrb[5].mxu0 }
 0x58f   : > { %v395_v41 = vpop.f32.mrb[6].mxu0 }
 0x590   : > { %402 = vrot.lane.b32.xlu1 %v751_v39, %s883_s4  ;;  %v793_v42 = vpop.f32.mrb[7].mxu0 }
 0x5c2   : > { %v519_v43 = vpop.f32.mrb[8].mxu0 }
 0x5c3   : > { %v752_v44 = vpack.c.bf16 %v519_v43, %v519_v43  ;;  %v804_v45 = vpop.f32.mrb[9].mxu0 }
 0x5c4   : > { %v522_v46 = vpop.f32.mrb[10].mxu0 }
 0x5c5   : > { %529 = vrot.lane.b32.xlu0 %v752_v44, %s884_s5  ;;  %v805_v0 = vpop.f32.mrb[11].mxu0 }
 0x5ca   : > { %v646_v47 = vpop.f32.mrb[12].mxu0 }
 0x5cb   : > { %v753_v48 = vpack.c.bf16 %v646_v47, %v646_v47  ;;  %v816_v49 = vpop.f32.mrb[13].mxu0 }
 0x5cc   : > { %v649_v50 = vpop.f32.mrb[14].mxu0 }
 0x5cd   : > { %656 = vrot.lane.b32.xlu1 %v753_v48, %s885_s6  ;;  %v817_v51 = vpop.f32.mrb[15].mxu0 }
 0x602   : > { %v403_v52 = vpop.permute.xlu1 %402 }
 0x603   : > { %406 = vst.msk [vmem:[%s974_s28] sm:$0xf] %vm405_vm4, %v403_v52 }
 0x637   : > { %v530_v53 = vpop.permute.xlu0 %529 }
 0x638   : > { %533 = vst.msk [vmem:[%s974_s28] sm:$0xf] %vm532_vm5, %v530_v53 }
 0x63f   : > { %v657_v54 = vpop.permute.xlu1 %656 }
 0x640   : > { %660 = vst.msk [vmem:[%s974_s28] sm:$0xf] %vm659_vm6, %v657_v54 }
 0x641 PF: > { %s12_s9 = sadd.s32 1, %s868_s9  }
 0x642   : > { %p9_p4 = scmp.ge.s32.totalorder %s12_s9, 4  }
 0x644   :  { %11 = sbr.rel (!%p9_p4) target bundleno = 1 (0x1), region = 61 }

// kernel: bert_for_classification_forward.16
= control target key start
LH: loop header
LB: loop body
LE: loop exit
PB: predicated region body
PF: predicated region fallthrough
CT: control target
= control target key end

     0   :  { %vm19_vm0 = vcmask 523264   ;;  %v173_v0 = vmov 0.0   ;;  %vm174_vm1 = vmmov 0   ;;  %vm47_vm2 = vcmask 261120   ;;  %s217_s1 = inlined_call_operand.vmem [shape: bf16[32,64], index: 1, kind: input, shape index: {}]   ;;  %s218_s0 = inlined_call_operand.vmem [shape: bf16[16,32], index: 0, kind: input, shape index: {}]   ;;  %s219_s2 = inlined_call_operand.vmem [shape: f32[1,64], index: 2, kind: input, shape index: {}]   ;;  %s220_s3 = inlined_call_operand.vmem [shape: bf16[16,64], index: 3, kind: output, shape index: {}]  }
   0x1   :  { %156 = vmatprep.subr.bf16.mxu0 %v173_v0  ;;  %v166_v1 = vld [vmem:[%s217_s1] sm:$0xff]   ;;  %160 = vmatprep.mubr.msk.bf16.mxu0 %vm174_vm1, %v173_v0  ;;  %20 = vst.msk [vmem:[#allocation2] sm:$0xff] %vm19_vm0, %v173_v0  ;;  %21 = vst.msk [vmem:[#allocation2 + $0x8] sm:$0xff] %vm19_vm0, %v173_v0  ;;  %v167_v2 = vld [vmem:[%s217_s1 + $0x8] sm:$0xff]   ;;  %vm137_vm3 = vcmask 519168  }
   0x2   :  { %157 = vmatpush3.bf16.msra.mxu0 %v166_v1  ;;  %v168_v3 = vld [vmem:[%s218_s0] sm:$0xff]  }
   0x3   :  { %158 = vmatprep.subr.bf16.mxu0 %v173_v0  ;;  %v148_v12 = vld [vmem:[%s219_s2] ss:$0 sm:$0xff] }
   0x6   :  { %159 = vmatpush3.bf16.msra.mxu0 %v167_v2 }
   0x8   :  { %v22_v4 = vld [vmem:[#allocation2] sm:$0xff]  ;;  %v23_v6 = vld [vmem:[#allocation2 + $0x8] sm:$0xff] }
   0x9   :  { %161 = vmatmul.mubr.msk.bf16.vlgmr.msra.gmra.mrb[0].mxu0 %vm47_vm2, %v168_v3 }
  0xdc   :  { %v85_v5 = vpop.f32.mrb[0].mxu0 }
  0xdd   :  { %v92_v7 = vadd.f32 %v85_v5, %v22_v4  ;;  %v162_v8 = vpop.f32.mrb[1].mxu0 }
  0xde   :  { %v88_v9 = vpop.f32.mrb[2].mxu0 }
  0xdf   :  { %95 = vst.msk [vmem:[#allocation2] sm:$0xff] %vm19_vm0, %v92_v7  ;;  %v93_v10 = vadd.f32 %v88_v9, %v23_v6  ;;  %v163_v11 = vpop.f32.mrb[3].mxu0 }
  0xe1   :  { %96 = vst.msk [vmem:[#allocation2 + $0x8] sm:$0xff] %vm19_vm0, %v93_v10 }
  0xe6   :  { %v100_v13 = vld [vmem:[#allocation2] sm:$0xff] }
  0xe7   :  { %v109_v14 = vadd.f32 %v148_v12, %v100_v13 }
  0xe8   :  { %v101_v15 = vld [vmem:[#allocation2 + $0x8] sm:$0xff] }
  0xe9   :  { %v111_v16 = vmul.f32 %v109_v14, %v109_v14  ;;  %v110_v17 = vadd.f32 %v148_v12, %v101_v15 }
  0xeb   :  { %v113_v18 = vmul.f32 %v111_v16, %v109_v14  ;;  %v112_v19 = vmul.f32 %v110_v17, %v110_v17 }
  0xed   :  { %v115_v20 = vmul.f32 0.044715, %v113_v18  ;;  %v114_v21 = vmul.f32 %v112_v19, %v110_v17 }
  0xef   :  { %v117_v22 = vadd.f32 %v115_v20, %v109_v14  ;;  %v116_v23 = vmul.f32 0.044715, %v114_v21 }
  0xf1   :  { %v119_v24 = vmul.f32 0.7978846, %v117_v22  ;;  %v118_v25 = vadd.f32 %v116_v23, %v110_v17 }
  0xf3   :  { %169 = vtanh.f32 %v119_v24  ;;  %v120_v26 = vmul.f32 0.7978846, %v118_v25 }
  0xf5   :  { %171 = vtanh.f32 %v120_v26 }
  0xfd   :  { %v170_v27 = vpop.eup %169 }
  0xfe   :  { %v123_v28 = vadd.f32 1.0, %v170_v27 }
  0xff   :  { %v172_v29 = vpop.eup %171 }
 0x100   :  { %v125_v30 = vmul.f32 0.5, %v123_v28  ;;  %v124_v31 = vadd.f32 1.0, %v172_v29 }
 0x102   :  { %v127_v32 = vmul.f32 %v125_v30, %v109_v14  ;;  %v126_v33 = vmul.f32 0.5, %v124_v31 }
 0x104   :  { %v151_v34 = vpack.c.bf16 %v127_v32, %v127_v32  ;;  %v128_v35 = vmul.f32 %v126_v33, %v110_v17 }
 0x106   :  { %138 = vst.msk [vmem:[%s220_s3] sm:$0xf] %vm137_vm3, %v151_v34  ;;  %v152_v36 = vpack.c.bf16 %v128_v35, %v128_v35 }
 0x108   :  { %139 = vst.msk [vmem:[%s220_s3 + $0x4] sm:$0xf] %vm137_vm3, %v152_v36 }

// kernel: bert_for_classification_forward.17
= control target key start
LH: loop header
LB: loop body
LE: loop exit
PB: predicated region body
PF: predicated region fallthrough
CT: control target
= control target key end

     0   :  { %vm28_vm0 = vcmask 261120   ;;  %v247_v0 = vmov 0.0   ;;  %vm248_vm1 = vmmov 0   ;;  %vm72_vm2 = vcmask 523264   ;;  %s325_s1 = inlined_call_operand.vmem [shape: bf16[64,32], index: 1, kind: input, shape index: {}]   ;;  %s326_s0 = inlined_call_operand.vmem [shape: bf16[16,64], index: 0, kind: input, shape index: {}]   ;;  %s327_s3 = inlined_call_operand.vmem [shape: bf16[16,32], index: 3, kind: input, shape index: {}]   ;;  %s328_s2 = inlined_call_operand.vmem [shape: f32[1,32], index: 2, kind: input, shape index: {}]   ;;  %s329_s4 = inlined_call_operand.vmem [shape: f32[1,32], index: 4, kind: input, shape index: {}]   ;;  %s330_s5 = inlined_call_operand.vmem [shape: f32[1,32], index: 5, kind: input, shape index: {}]   ;;  %s331_s6 = inlined_call_operand.vmem [shape: bf16[16,32], index: 6, kind: output, shape index: {}]  }
   0x1   :  { %224 = vmatprep.subr.bf16.mxu0 %v247_v0  ;;  %v238_v1 = vld [vmem:[%s325_s1] sm:$0xff]   ;;  %232 = vmatprep.mubr.msk.bf16.mxu0 %vm248_vm1, %v247_v0  ;;  %29 = vst.msk [vmem:[#allocation2] sm:$0xff] %vm28_vm0, %v247_v0  ;;  %30 = vst.msk [vmem:[#allocation2 + $0x8] sm:$0xff] %vm28_vm0, %v247_v0  ;;  %v239_v2 = vld [vmem:[%s325_s1 + $0x8] sm:$0xff]   ;;  %vm195_vm3 = vcmask 257024  }
   0x2   :  { %225 = vmatpush3.bf16.msra.mxu0 %v238_v1  ;;  %v240_v3 = vld [vmem:[%s325_s1 + $0x10] sm:$0xff]   ;;  %v241_v4 = vld [vmem:[%s325_s1 + $0x18] sm:$0xff]   ;;  %v242_v5 = vld [vmem:[%s326_s0] sm:$0xff]  }
   0x3   :  { %226 = vmatprep.subr.bf16.mxu0 %v247_v0  ;;  %v216_v14 = vld [vmem:[%s327_s3] sm:$0xff]  }
   0x4   :  { %v208_v15 = vld [vmem:[%s328_s2] ss:$0 sm:$0xff]  ;;  %v217_v16 = vunpack.c.l.bf16 %v216_v14  ;;  %v218_v19 = vunpack.c.h.bf16 %v216_v14 }
   0x5   :  { %v209_v43 = vld [vmem:[%s329_s4] ss:$0 sm:$0xff] }
   0x6   :  { %227 = vmatpush3.bf16.msra.mxu0 %v239_v2  ;;  %v210_v45 = vld [vmem:[%s330_s5] ss:$0 sm:$0xff] }
   0x7   :  { %228 = vmatprep.subr.bf16.mxu0 %v247_v0 }
   0x8   :  { %v31_v6 = vld [vmem:[#allocation2] sm:$0xff]  ;;  %v32_v8 = vld [vmem:[#allocation2 + $0x8] sm:$0xff] }
   0xa   :  { %229 = vmatpush3.bf16.msra.mxu0 %v240_v3 }
   0xb   :  { %230 = vmatprep.subr.bf16.mxu0 %v247_v0 }
   0xe   :  { %231 = vmatpush3.bf16.msra.mxu0 %v241_v4 }
  0x11   :  { %233 = vmatmul.mubr.msk.bf16.vlgmr.msra.gmra.mrb[0].mxu0 %vm72_vm2, %v242_v5 }
  0xe4   :  { %v110_v7 = vpop.f32.mrb[0].mxu0 }
  0xe5   :  { %v117_v9 = vadd.f32 %v110_v7, %v31_v6  ;;  %v234_v10 = vpop.f32.mrb[1].mxu0 }
  0xe6   :  { %v113_v11 = vpop.f32.mrb[2].mxu0 }
  0xe7   :  { %120 = vst.msk [vmem:[#allocation2] sm:$0xff] %vm28_vm0, %v117_v9  ;;  %v118_v12 = vadd.f32 %v113_v11, %v32_v8  ;;  %v235_v13 = vpop.f32.mrb[3].mxu0 }
  0xe9   :  { %121 = vst.msk [vmem:[#allocation2 + $0x8] sm:$0xff] %vm28_vm0, %v118_v12 }
  0xee   :  { %v125_v17 = vld [vmem:[#allocation2] sm:$0xff] }
  0xef   :  { %v134_v18 = vadd.f32 %v208_v15, %v125_v17 }
  0xf0   :  { %v126_v20 = vld [vmem:[#allocation2 + $0x8] sm:$0xff] }
  0xf1   :  { %v140_v21 = vadd.f32 %v217_v16, %v134_v18  ;;  %v135_v22 = vadd.f32 %v208_v15, %v126_v20 }
  0xf3   :  { %v142_v23 = vsel %vm28_vm0, %v140_v21, 0.0  ;;  %v141_v24 = vadd.f32 %v218_v19, %v135_v22 }
  0xf4   :  { %143 = vadd.xlane.f32.xlu0 %v142_v23 }
  0xf5   :  { %v145_v25 = vsel %vm28_vm0, %v141_v24, 0.0 }
  0xf8   :  { %146 = vadd.xlane.f32.xlu0 %v145_v25 }
 0x181   :  { %v144_v26 = vpop.xlane.xlu0 %143 }
 0x182   :  { %v149_v27 = vmul.f32 0.03125, %v144_v26 }
 0x184   :  { %v151_v28 = vsub.f32 %v140_v21, %v149_v27 }
 0x185   :  { %v147_v29 = vpop.xlane.xlu0 %146 }
 0x186   :  { %v150_v30 = vmul.f32 0.03125, %v147_v29  ;;  %v153_v31 = vmul.f32 %v151_v28, %v151_v28 }
 0x188   :  { %v152_v32 = vsub.f32 %v141_v24, %v150_v30  ;;  %v155_v33 = vsel %vm28_vm0, %v153_v31, 0.0 }
 0x189   :  { %156 = vadd.xlane.f32.xlu1 %v155_v33 }
 0x18a   :  { %v154_v34 = vmul.f32 %v152_v32, %v152_v32 }
 0x18c   :  { %v158_v35 = vsel %vm28_vm0, %v154_v34, 0.0 }
 0x18d   :  { %159 = vadd.xlane.f32.xlu1 %v158_v35 }
 0x216   :  { %v157_v36 = vpop.xlane.xlu1 %156 }
 0x217   :  { %v161_v37 = vmul.f32 0.03125, %v157_v36 }
 0x219   :  { %v163_v38 = vadd.f32 1e-12, %v161_v37 }
 0x21a   :  { %v160_v39 = vpop.xlane.xlu1 %159 }
 0x21b   :  { %243 = vrsqrt.f32 %v163_v38  ;;  %v162_v40 = vmul.f32 0.03125, %v160_v39 }
 0x21d   :  { %v164_v41 = vadd.f32 1e-12, %v162_v40 }
 0x21f   :  { %245 = vrsqrt.f32 %v164_v41 }
 0x225   :  { %v244_v42 = vpop.eup %243 }
 0x226   :  { %v167_v44 = vmul.f32 %v244_v42, %v151_v28 }
 0x228   :  { %v176_v46 = vmul.f32 %v209_v43, %v167_v44 }
 0x229   :  { %v246_v47 = vpop.eup %245 }
 0x22a   :  { %v185_v48 = vadd.f32 %v210_v45, %v176_v46  ;;  %v168_v49 = vmul.f32 %v246_v47, %v152_v32 }
 0x22c   :  { %v213_v50 = vpack.c.bf16 %v185_v48, %v185_v48  ;;  %v177_v51 = vmul.f32 %v209_v43, %v168_v49 }
 0x22e   :  { %196 = vst.msk [vmem:[%s331_s6] sm:$0xf] %vm195_vm3, %v213_v50  ;;  %v186_v52 = vadd.f32 %v210_v45, %v177_v51 }
 0x230   :  { %v214_v53 = vpack.c.bf16 %v186_v52, %v186_v52 }
 0x232   :  { %197 = vst.msk [vmem:[%s331_s6 + $0x4] sm:$0xf] %vm195_vm3, %v214_v53 }

// kernel: bert_for_classification_forward.23
= control target key start
LH: loop header
LB: loop body
LE: loop exit
PB: predicated region body
PF: predicated region fallthrough
CT: control target
= control target key end

     0   :  { %v303_v1 = vmov 0.0   ;;  %vm304_vm0 = vmmov 0   ;;  %s406_s0 = inlined_call_operand.vmem [shape: bf16[2,32], index: 0, kind: input, shape index: {}]   ;;  %s407_s1 = inlined_call_operand.vmem [shape: bf16[32,32], index: 1, kind: input, shape index: {}]   ;;  %s408_s2 = inlined_call_operand.vmem [shape: f32[1,32], index: 2, kind: input, shape index: {}]   ;;  %s409_s3 = inlined_call_operand.vmem [shape: bf16[32,2], index: 3, kind: input, shape index: {}]   ;;  %s410_s4 = inlined_call_operand.vmem [shape: f32[1,2], index: 4, kind: input, shape index: {}]   ;;  %s411_s5 = inlined_call_operand.vmem [shape: f32[1,2], index: 5, kind: input, shape index: {}]   ;;  %s412_s6 = inlined_call_operand.vmem [shape: f32[1,2], index: 6, kind: input, shape index: {}]   ;;  %s413_s7 = inlined_call_operand.vmem [shape: f32[1,2], index: 7, kind: input, shape index: {}]   ;;  %s414_s8 = inlined_call_operand.vmem [shape: f32[1,2], index: 8, kind: input, shape index: {}]   ;;  %s415_s9 = inlined_call_operand.hbm [shape: f32[2,2], index: 9, kind: output, shape index: {}]  }
   0x1   :  { %v267_v0 = vld [vmem:[%s407_s1] sm:$0xff]   ;;  %248 = vmatprep.subr.bf16.mxu0 %v303_v1  ;;  %256 = vmatprep.subr.bf16.mxu1 %v303_v1  ;;  %v268_v2 = vld [vmem:[%s407_s1 + $0x8] sm:$0xff]  }
   0x2   :  { %249 = vmatpush3.bf16.msra.mxu0 %v267_v0  ;;  %252 = vmatprep.mubr.msk.bf16.mxu0 %vm304_vm0, %v303_v1 }
   0x3   :  { %250 = vmatprep.subr.bf16.mxu0 %v303_v1  ;;  %260 = vmatprep.mubr.msk.bf16.mxu1 %vm304_vm0, %v303_v1 }
   0x4   :  { %14 = vsyncpa [#allocation3], 0  ;;  %v34_v3 = vld [vmem:[%s406_s0] sm:$0x1]  ;;  %vm58_vm1 = vcmask 261120   ;;  %v270_v5 = vld [vmem:[%s409_s3 + $0x8] sm:$0xff]   ;;  %v182_v16 = vlaneseq }
   0x5   :  { %v269_v4 = vld [vmem:[%s409_s3] sm:$0xff]   ;;  %vm204_vm2 = vcmask 9216  }
   0x6   :  { %251 = vmatpush3.bf16.msra.mxu0 %v268_v2  ;;  %257 = vmatpush3.bf16.msra.mxu1 %v269_v4  ;;  %v231_v6 = vld [vmem:[%s408_s2] ss:$0 sm:$0xff]  ;;  %v183_v17 = vshrl.u32 %v182_v16, 7 }
   0x7   :  { %258 = vmatprep.subr.bf16.mxu1 %v303_v1  ;;  %v178_v14 = vld [vmem:[%s414_s8] sm:$0x1] }
   0x8   :  { %v179_v15 = vadd.f32 1e-05, %v178_v14  ;;  %v184_v18 = vsub.s32 0, %v183_v17  ;;  %v235_v20 = vld [vmem:[%s410_s4] ss:$0 sm:$0xff]  ;;  %s305_s4 = smov [#allocation2]  }
   0x9   :  { %253 = vmatmul.mubr.msk.bf16.vlgmr.msra.gmra.mrb[0].mxu0 %vm58_vm1, %v34_v3  ;;  %v239_v22 = vld [vmem:[%s413_s7] ss:$0 sm:$0xff] }
   0xa   :  { %259 = vmatpush3.bf16.msra.mxu1 %v270_v5  ;;  %v240_v29 = vld [vmem:[%s411_s5] ss:$0 sm:$0xff]  ;;  %s223_s5 = sshll.u32 %s305_s4, 4  ;;  %s224_s5 = int_to_ptr.vmem [resolvable:$true] %s223_s5 }
   0xb   :  { %v241_v31 = vld [vmem:[%s412_s6] ss:$0 sm:$0xff]  ;;  %s279_s6 = scalar_lea.vmem %s224_s5, 32  ;;  %p284_p1 = scmp.lt.s32.totalorder %s224_s5, %s224_s5 }
   0xc   :  { %p280_p0 = scmp.ne.s32.totalorder %s224_s5, %s279_s6  ;;  %p285_p2 = scmp.lt.s32.totalorder %s279_s6, %s279_s6 }
   0xe   :  { %p286_p3 = por %p285_p2, %p284_p1 }
  0x10   :  { %p287_p4 = pnand %p286_p3, %p280_p0 }
  0xdc   :  { %v96_v7 = vpop.f32.mrb[0].mxu0 }
  0xdd   :  { %v97_v8 = vadd.f32 %v231_v6, %v96_v7  ;;  %v254_v9 = vpop.f32.mrb[1].mxu0 }
  0xde   :  { %v99_v10 = vpop.f32.mrb[2].mxu0 }
  0xdf   :  { %271 = vtanh.f32 %v97_v8  ;;  %v255_v11 = vpop.f32.mrb[3].mxu0 }
  0xe0   :  { %273 = vrsqrt.f32 %v179_v15 }
  0xe9   :  { %v272_v12 = vpop.eup %271 }
  0xea   :  { %v103_v13 = vpack.c.bf16 %v272_v12, %v272_v12  ;;  %v274_v19 = vpop.eup %273 }
  0xeb   :  { %v185_v24 = vrot.slane %v274_v19, %v184_v18 }
  0xec   :  { %261 = vmatmul.mubr.msk.bf16.vlgmr.msra.gmra.mrb[0].mxu1 %vm58_vm1, %v103_v13 }
 0x1bf   :  { %v164_v21 = vpop.f32.mrb[0].mxu1 }
 0x1c0   :  { %v165_v23 = vadd.f32 %v235_v20, %v164_v21  ;;  %v262_v25 = vpop.f32.mrb[1].mxu1 }
 0x1c1   :  { %v167_v26 = vpop.f32.mrb[2].mxu1 }
 0x1c2   :  { %v177_v27 = vsub.f32 %v165_v23, %v239_v22  ;;  %v263_v28 = vpop.f32.mrb[3].mxu1 }
 0x1c4   :  { %v187_v30 = vmul.f32 %v185_v24, %v177_v27 }
 0x1c6   :  { %v195_v32 = vmul.f32 %v240_v29, %v187_v30 }
 0x1c8   :  { %v203_v33 = vadd.f32 %v241_v31, %v195_v32 }
 0x1ca   :  { %v205_v34 = vsel %vm204_vm2, %v203_v33, -inf }
 0x1cb   :  { %206 = vmax.xlane.f32.xlu0 %v205_v34 }
 0x258   :  { %v207_v35 = vpop.xlane.xlu0 %206 }
 0x259   :  { %v208_v36 = vsub.f32 %v203_v33, %v207_v35 }
 0x25b   :  { %v209_v37 = vmul.f32 1.442695, %v208_v36 }
 0x25d   :  { %275 = vpow2.f32 %v209_v37 }
 0x267   :  { %v276_v38 = vpop.eup %275 }
 0x268   :  { %v211_v39 = vsel %vm204_vm2, %v276_v38, 0.0 }
 0x269   :  { %212 = vadd.xlane.f32.xlu0 %v211_v39 }
 0x2f6   :  { %v213_v40 = vpop.xlane.xlu0 %212 }
 0x2f7   :  { %277 = vrcp.f32 %v213_v40 }
 0x301   :  { %v278_v41 = vpop.eup %277 }
 0x302   :  { %v215_v42 = vmul.f32 %v278_v41, %v276_v38 }
 0x304   :  { %216 = vst.msk [vmem:[#allocation2] sm:$0x3] %vm204_vm2, %v215_v42 }
 0x305   :  { %290 = shalt.err (!%p287_p4)
}
 0x306   :  { %s291_s27 = scalar_lea.hbm %s415_s9, 32 }
 0x307   :  { %p292_p5 = scmp.ne.s32.totalorder %s415_s9, %s291_s27  ;;  %p295_p6 = scmp.lt.u32.totalorder %s291_s27, %s415_s9 }
 0x309   :  { %p297_p7 = pnand %p295_p6, %p292_p5 }
 0x30b   :  { %300 = shalt.err (!%p297_p7)
}
 0x30c   :  { %226 = dma.vmem_to_hbm [thread:$0]  %s224_s5, 32, %s415_s9, [#allocation3]  }
 0x30d   :  { %301 = dma.done.wait [#allocation3], 32  }
 0x30e   :  { %302 = vsyncadd [#allocation3], 4294967264 }
 0x30f   :  { %230 = vsyncpa [#allocation3], 1 }

</bundles_post_ra>
